<compile_context>
chip_gen: v7x
topology: tpu7x:2x2x1
jax: 0.10.0
libtpu: 0.0.40
codegen_flags: <defaults>
</compile_context>

<pallas_src>
from functools import partial, lru_cache

import jax
import jax.numpy as jnp
from jax import lax
from jax.experimental import pallas as pl
from jax.experimental.pallas import tpu as pltpu

# ---------------- solver constants (match module globals) ----------------
Re = 1.0
dt = 0.01
dx = 1.0
dy = 1.0
ITERATION = 5  # global `iteration` in the reference

# Stencils (PyTorch conv2d / cross-correlation semantics), standard CFD
# central-difference / 5-point operators (w1/w2/w3/wA not defined in the
# reference snippet; w_res IS defined and is all zeros):
#   xadv(x)[i,j] = 0.5*(x[i,j+1] - x[i,j-1]) / dx
#   yadv(x)[i,j] = 0.5*(x[i+1,j] - x[i-1,j]) / dy
#   diff(x)[i,j] = (x[i-1,j]+x[i+1,j]+x[i,j-1]+x[i,j+1]-4*x[i,j]) / (Re*dx^2)
#   A(x)         = same 5-point Laplacian scaled by 1/dx^2 (edge-replicate BC)
DIAG = -4.0 / (dx * dx)          # = wA[0,0,1,1]
INV_DIAG = 1.0 / DIAG
INV_DT = 1.0 / dt
INV_RE_DX2 = 1.0 / (Re * dx * dx)
INV_DX2 = 1.0 / (dx * dx)
HALF_INV_DX3 = 0.5 * dx ** -3

_VMEM = pl.BlockSpec(memory_space=pltpu.MemorySpace.VMEM)


def _round_up(n, m):
    return ((n + m - 1) // m) * m


def _vmem_limit_bytes(Hc, Wc):
    """Footprint-derived scoped-VMEM limit, capped below 48 MiB so the same
    code path is safe on v7x (64 MiB VMEM) as well as v5e/v6e (128 MiB)."""
    slab = Hc * Wc * 4
    footprint = 11 * slab                    # 6 inputs + 3 outputs + 2 scratch
    est = 4 * footprint + (8 << 20)          # compiler spill / temp headroom
    return int(min(max(est, 16 << 20), 48 << 20))


@lru_cache(maxsize=None)
def _build_fused_step(H, W, Hc, Wc, iteration):
    """One pallas_call for the whole forward pass on an (Hc, Wc) slab whose
    true (physical) domain is the top-left (H, W) corner."""

    def kernel(u_ref, v_ref, p_ref, k1_ref, fx_ref, fy_ref,
               u_o, v_o, p_o, gpx_s, gpy_s):
        # Only the iotas are kept live; boundary comparisons are recomputed at
        # use sites (cheap VPU ops; VPU is not the binding unit here).
        row = lax.broadcasted_iota(jnp.int32, (Hc, Wc), 0)
        col = lax.broadcasted_iota(jnp.int32, (Hc, Wc), 1)

        # Neighbor access via XLU rolls + masks of the TRUE (H, W) domain.
        #   edge_bc=True  -> replicate (pressure / edge pad)
        #   edge_bc=False -> zero      (velocity / k / zero pad)
        def xshifts(x, edge_bc):
            lf = pltpu.roll(x, 1, 1)          # x[i, j-1]
            rt = pltpu.roll(x, Wc - 1, 1)     # x[i, j+1]
            if edge_bc:
                lf = jnp.where(col == 0, x, lf)
                rt = jnp.where(col == W - 1, x, rt)
            else:
                lf = jnp.where(col == 0, 0.0, lf)
                rt = jnp.where(col == W - 1, 0.0, rt)
            return lf, rt

        def yshifts(x, edge_bc):
            up = pltpu.roll(x, 1, 0)          # x[i-1, j]
            dn = pltpu.roll(x, Hc - 1, 0)     # x[i+1, j]
            if edge_bc:
                up = jnp.where(row == 0, x, up)
                dn = jnp.where(row == H - 1, x, dn)
            else:
                up = jnp.where(row == 0, 0.0, up)
                dn = jnp.where(row == H - 1, 0.0, dn)
            return up, dn

        def shifts4(x, edge_bc):              # (lf, rt, up, dn)
            lf, rt = xshifts(x, edge_bc)
            up, dn = yshifts(x, edge_bc)
            return lf, rt, up, dn

        # dt * grad(p0), parked in VMEM scratch (read by both stages) instead
        # of being held in vregs across the whole kernel.
        p0 = p_ref[...]
        plf, prt = xshifts(p0, True)
        pup, pdn = yshifts(p0, True)
        gpx_s[...] = (prt - plf) * (0.5 * dt / dx)
        gpy_s[...] = (pdn - pup) * (0.5 * dt / dy)

        # 8 hoisted zero-BC masked shifts of the ORIGINAL u, v:
        #   * serve directly as the predictor's advection/diffusion shifts,
        #   * reused by BOTH stages for diff(u0*k_u)/diff(v0*k_v) through the
        #     exact identity  roll(a*b) == roll(a) * roll(b).
        u0_s = shifts4(u_ref[...], False)
        v0_s = shifts4(v_ref[...], False)

        def stage(vel_u, vel_v, vel_u_s, vel_v_s, alpha, with_force):
            lfu, rtu, upu, dnu = vel_u_s
            lfv, rtv, upv, dnv = vel_v_s
            adx_u = (rtu - lfu) * (0.5 / dx)
            ady_u = (dnu - upu) * (0.5 / dy)
            ad2_u = (upu + dnu + lfu + rtu - 4.0 * vel_u) * INV_RE_DX2
            adx_v = (rtv - lfv) * (0.5 / dx)
            ady_v = (dnv - upv) * (0.5 / dy)
            ad2_v = (upv + dnv + lfv + rtv - 4.0 * vel_v) * INV_RE_DX2

            # Petrov-Galerkin k-vector (EUP approx reciprocal; den >= 0.001)
            common = HALF_INV_DX3 * (jnp.abs(vel_u) * dx + jnp.abs(vel_v) * dy)
            den_u = 0.001 + (jnp.abs(adx_u) + jnp.abs(ady_u)) * HALF_INV_DX3
            den_v = 0.001 + (jnp.abs(adx_v) + jnp.abs(ady_v)) * HALF_INV_DX3
            k1v = k1_ref[...]            # loaded at point of use
            k_u = jnp.minimum((0.25 * dx) * jnp.abs(common * ad2_u)
                              * pl.reciprocal(den_u, approx=True), k1v)
            k_v = jnp.minimum((0.25 * dy) * jnp.abs(common * ad2_v)
                              * pl.reciprocal(den_v, approx=True), k1v)

            # One set of masked rolls per k field, shared by diff(k) and
            # diff(u0*k): masked_roll(u0*k) == masked_roll(u0)*masked_roll(k).
            klfu, krtu, kupu, kdnu = shifts4(k_u, False)
            klfv, krtv, kupv, kdnv = shifts4(k_v, False)
            u0 = u_ref[...]
            v0 = v_ref[...]
            d_ku = (kupu + kdnu + klfu + krtu - 4.0 * k_u) * INV_RE_DX2
            d_kv = (kupv + kdnv + klfv + krtv - 4.0 * k_v) * INV_RE_DX2
            d_pu = (u0_s[2] * kupu + u0_s[3] * kdnu + u0_s[0] * klfu
                    + u0_s[1] * krtu - 4.0 * (u0 * k_u)) * INV_RE_DX2
            d_pv = (v0_s[2] * kupv + v0_s[3] * kdnv + v0_s[0] * klfv
                    + v0_s[1] * krtv - 4.0 * (v0 * k_v)) * INV_RE_DX2

            k_x = 1.5 * (k_u * ad2_u + d_pu - vel_u * d_ku)
            k_y = 1.5 * (k_v * ad2_v + d_pv - vel_v * d_kv)
            nu = (u0 + (alpha * dt) * (Re * k_x - vel_u * adx_u - vel_v * ady_u)
                  - gpx_s[...])
            nv = (v0 + (alpha * dt) * (Re * k_y - vel_u * adx_v - vel_v * ady_v)
                  - gpy_s[...])
            if with_force:               # predictor (force_scale==0) skips this
                nu = nu - fx_ref[...] * dt
                nv = nv - fy_ref[...] * dt
            return nu, nv

        # Predictor: half step, no force; reuses the hoisted u0/v0 shifts.
        b_u, b_v = stage(u_ref[...], v_ref[...], u0_s, v0_s, 0.5, False)
        # Corrector: full step, with force; needs its own velocity shifts.
        bu_s = shifts4(b_u, False)
        bv_s = shifts4(b_v, False)
        u_new, v_new = stage(b_u, b_v, bu_s, bv_s, 1.0, True)

        # Pressure RHS: b = -(xadv(zero_pad(u_new)) + yadv(zero_pad(v_new)))/dt
        # pre-scaled by 1/DIAG (hoisted out of the Jacobi loop).
        u_lf, u_rt = xshifts(u_new, False)
        v_up, v_dn = yshifts(v_new, False)
        b_scaled = (-((u_rt - u_lf) * (0.5 / dx) + (v_dn - v_up) * (0.5 / dy))
                    * (INV_DT * INV_DIAG))

        lap_coef = INV_DX2 * INV_DIAG    # python constant

        def jacobi_body(_, p):
            lf, rt = xshifts(p, True)
            up, dn = yshifts(p, True)
            lap = up + dn + lf + rt - 4.0 * p
            return p - lap * lap_coef + b_scaled

        # Coarse multigrid correction elided: w_res == 0 in the reference, so
        # the correction w and all restricted residuals are identically zero.
        p_new = lax.fori_loop(0, iteration, jacobi_body, p_ref[...], unroll=True)

        # Final projection
        glf, grt = xshifts(p_new, True)
        gup, gdn = yshifts(p_new, True)
        u_o[...] = u_new - (grt - glf) * (0.5 * dt / dx)
        v_o[...] = v_new - (gdn - gup) * (0.5 * dt / dy)
        p_o[...] = p_new

    shp = jax.ShapeDtypeStruct((Hc, Wc), jnp.float32)
    return pl.pallas_call(
        kernel,
        out_shape=(shp, shp, shp),
        in_specs=[_VMEM] * 6,
        out_specs=(_VMEM,) * 3,
        scratch_shapes=[pltpu.VMEM((Hc, Wc), jnp.float32),
                        pltpu.VMEM((Hc, Wc), jnp.float32)],
        input_output_aliases={0: 0, 1: 1, 2: 2},   # u/v/p update in place
        compiler_params=pltpu.CompilerParams(
            vmem_limit_bytes=_vmem_limit_bytes(Hc, Wc)),
    )


# ---------------- full forward pass ----------------------------------------
def ai4dem_fluids_forward(values_u, values_v, values_p, k1, Fx, Fy,
                          iteration=ITERATION):
    # squeeze NCHW (1,1,H,W) -> (H,W); compute in float32
    u = values_u[0, 0].astype(jnp.float32)
    v = values_v[0, 0].astype(jnp.float32)
    p = values_p[0, 0].astype(jnp.float32)
    k1_2d = k1[0, 0].astype(jnp.float32)
    fx = Fx[0, 0].astype(jnp.float32)
    fy = Fy[0, 0].astype(jnp.float32)

    H, W = u.shape
    # Lane/sublane-aligned compute slab (H -> mult of 8, W -> mult of 128);
    # in-kernel BC masks use the TRUE (H, W) so pad values never leak in.
    Hc = max(8, _round_up(H, 8))
    Wc = max(128, _round_up(W, 128))

    def pad(x):
        if (Hc, Wc) == (H, W):
            return x
        return jnp.pad(x, ((0, Hc - H), (0, Wc - W)))

    step = _build_fused_step(H, W, Hc, Wc, int(iteration))
    u_out, v_out, p_out = step(pad(u), pad(v), pad(p), pad(k1_2d), pad(fx), pad(fy))
    u_out = u_out[:H, :W]
    v_out = v_out[:H, :W]
    p_out = p_out[:H, :W]

    # Coarse multigrid correction path: w_res is all zeros in the reference,
    # so every restricted residual and the correction w are identically zero.
    w_corr = jnp.zeros((H, W), jnp.float32)      # prolonged correction (no-op)
    r_coarse = jnp.zeros((2, 2), jnp.float32)    # coarsest restricted residual

    # restore NCHW (1,1,·,·)
    return (u_out[None, None], v_out[None, None], p_out[None, None],
            w_corr[None, None], r_coarse[None, None])


# ---------------- demo ------------------------------------------------------
if __name__ == "__main__":
    N = 16  # small spatial size (reference uses 128)
    shape = (1, 1, N, N)

    key = jax.random.PRNGKey(0)
    k1k, k2k, k3k, k4k, k5k = jax.random.split(key, 5)
    values_u = 0.1 * jax.random.normal(k1k, shape, jnp.float32)
    values_v = 0.1 * jax.random.normal(k2k, shape, jnp.float32)
    values_p = 0.1 * jax.random.normal(k3k, shape, jnp.float32)
    Fx = 0.01 * jax.random.normal(k4k, shape, jnp.float32)
    Fy = 0.01 * jax.random.normal(k5k, shape, jnp.float32)
    k1 = jnp.ones(shape, jnp.float32) * (dx * dx / dt)

    fwd = jax.jit(partial(ai4dem_fluids_forward, iteration=ITERATION))
    u_out, v_out, p_out, w_out, r_out = fwd(values_u, values_v, values_p, k1, Fx, Fy)
    jax.block_until_ready((u_out, v_out, p_out, w_out, r_out))

    assert u_out.shape == shape and v_out.shape == shape and p_out.shape == shape
    assert w_out.shape == shape and r_out.shape == (1, 1, 2, 2)
    assert bool(jnp.all(jnp.isfinite(u_out))) and bool(jnp.all(jnp.isfinite(p_out)))
    print("KERNEL_OK")
</pallas_src>

<mosaic_0001>
module attributes {stable_mosaic.version = 11 : i64} {
  func.func @kernel(%arg0: memref<16x128xf32, #tpu.memory_space<vmem>>, %arg1: memref<16x128xf32, #tpu.memory_space<vmem>>, %arg2: memref<16x128xf32, #tpu.memory_space<vmem>>, %arg3: memref<16x128xf32, #tpu.memory_space<vmem>>, %arg4: memref<16x128xf32, #tpu.memory_space<vmem>>, %arg5: memref<16x128xf32, #tpu.memory_space<vmem>>, %arg6: memref<16x128xf32, #tpu.memory_space<vmem>>, %arg7: memref<16x128xf32, #tpu.memory_space<vmem>>, %arg8: memref<16x128xf32, #tpu.memory_space<vmem>>, %arg9: memref<16x128xf32, #tpu.memory_space<vmem>>, %arg10: memref<16x128xf32, #tpu.memory_space<vmem>>) attributes {dimension_semantics = [], scalar_prefetch = 0 : i64, scratch_operands = 2 : i64, tpu.core_type = #tpu.core_type<tc>} {
    %0 = tpu.iota {dimensions = array<i32: 0>} : vector<16x128xi32>
    %1 = tpu.iota {dimensions = array<i32: 1>} : vector<16x128xi32>
    %c0 = arith.constant 0 : index
    %c0_0 = arith.constant 0 : index
    %2 = vector.load %arg2[%c0, %c0_0] : memref<16x128xf32, #tpu.memory_space<vmem>>, vector<16x128xf32>
    %c1_i32 = arith.constant 1 : i32
    %3 = tpu.dynamic_rotate %2 by %c1_i32 dim 1 : vector<16x128xf32>, i32 -> vector<16x128xf32>
    %c127_i32 = arith.constant 127 : i32
    %4 = tpu.dynamic_rotate %2 by %c127_i32 dim 1 : vector<16x128xf32>, i32 -> vector<16x128xf32>
    %c0_i32 = arith.constant 0 : i32
    %5 = vector.broadcast %c0_i32 : i32 to vector<16x128xi32>
    %6 = arith.cmpi eq, %1, %5 : vector<16x128xi32>
    %7 = arith.select %6, %2, %3 : vector<16x128xi1>, vector<16x128xf32>
    %c15_i32 = arith.constant 15 : i32
    %8 = vector.broadcast %c15_i32 : i32 to vector<16x128xi32>
    %9 = arith.cmpi eq, %1, %8 : vector<16x128xi32>
    %10 = arith.select %9, %2, %4 : vector<16x128xi1>, vector<16x128xf32>
    %c1_i32_1 = arith.constant 1 : i32
    %11 = tpu.dynamic_rotate %2 by %c1_i32_1 dim 0 : vector<16x128xf32>, i32 -> vector<16x128xf32>
    %c15_i32_2 = arith.constant 15 : i32
    %12 = tpu.dynamic_rotate %2 by %c15_i32_2 dim 0 : vector<16x128xf32>, i32 -> vector<16x128xf32>
    %c0_i32_3 = arith.constant 0 : i32
    %13 = vector.broadcast %c0_i32_3 : i32 to vector<16x128xi32>
    %14 = arith.cmpi eq, %0, %13 : vector<16x128xi32>
    %15 = arith.select %14, %2, %11 : vector<16x128xi1>, vector<16x128xf32>
    %c15_i32_4 = arith.constant 15 : i32
    %16 = vector.broadcast %c15_i32_4 : i32 to vector<16x128xi32>
    %17 = arith.cmpi eq, %0, %16 : vector<16x128xi32>
    %18 = arith.select %17, %2, %12 : vector<16x128xi1>, vector<16x128xf32>
    %19 = arith.subf %10, %7 : vector<16x128xf32>
    %cst = arith.constant 5.000000e-03 : f32
    %20 = vector.broadcast %cst : f32 to vector<16x128xf32>
    %21 = arith.mulf %19, %20 : vector<16x128xf32>
    %c0_5 = arith.constant 0 : index
    %c0_6 = arith.constant 0 : index
    %22 = vector.load %arg9[%c0_5, %c0_6] : memref<16x128xf32, #tpu.memory_space<vmem>>, vector<16x128xf32>
    tpu.vector_store %arg9[%c0_5, %c0_6], %21 {strides = array<i32>} : memref<16x128xf32, #tpu.memory_space<vmem>>, vector<16x128xf32>,
    %23 = arith.subf %18, %15 : vector<16x128xf32>
    %cst_7 = arith.constant 5.000000e-03 : f32
    %24 = vector.broadcast %cst_7 : f32 to vector<16x128xf32>
    %25 = arith.mulf %23, %24 : vector<16x128xf32>
    %c0_8 = arith.constant 0 : index
    %c0_9 = arith.constant 0 : index
    %26 = vector.load %arg10[%c0_8, %c0_9] : memref<16x128xf32, #tpu.memory_space<vmem>>, vector<16x128xf32>
    tpu.vector_store %arg10[%c0_8, %c0_9], %25 {strides = array<i32>} : memref<16x128xf32, #tpu.memory_space<vmem>>, vector<16x128xf32>,
    %c0_10 = arith.constant 0 : index
    %c0_11 = arith.constant 0 : index
    %27 = vector.load %arg0[%c0_10, %c0_11] : memref<16x128xf32, #tpu.memory_space<vmem>>, vector<16x128xf32>
    %c1_i32_12 = arith.constant 1 : i32
    %28 = tpu.dynamic_rotate %27 by %c1_i32_12 dim 1 : vector<16x128xf32>, i32 -> vector<16x128xf32>
    %c127_i32_13 = arith.constant 127 : i32
    %29 = tpu.dynamic_rotate %27 by %c127_i32_13 dim 1 : vector<16x128xf32>, i32 -> vector<16x128xf32>
    %c0_i32_14 = arith.constant 0 : i32
    %30 = vector.broadcast %c0_i32_14 : i32 to vector<16x128xi32>
    %31 = arith.cmpi eq, %1, %30 : vector<16x128xi32>
    %cst_15 = arith.constant 0.000000e+00 : f32
    %32 = vector.broadcast %cst_15 : f32 to vector<16x128xf32>
    %33 = arith.select %31, %32, %28 : vector<16x128xi1>, vector<16x128xf32>
    %c15_i32_16 = arith.constant 15 : i32
    %34 = vector.broadcast %c15_i32_16 : i32 to vector<16x128xi32>
    %35 = arith.cmpi eq, %1, %34 : vector<16x128xi32>
    %cst_17 = arith.constant 0.000000e+00 : f32
    %36 = vector.broadcast %cst_17 : f32 to vector<16x128xf32>
    %37 = arith.select %35, %36, %29 : vector<16x128xi1>, vector<16x128xf32>
    %c1_i32_18 = arith.constant 1 : i32
    %38 = tpu.dynamic_rotate %27 by %c1_i32_18 dim 0 : vector<16x128xf32>, i32 -> vector<16x128xf32>
    %c15_i32_19 = arith.constant 15 : i32
    %39 = tpu.dynamic_rotate %27 by %c15_i32_19 dim 0 : vector<16x128xf32>, i32 -> vector<16x128xf32>
    %c0_i32_20 = arith.constant 0 : i32
    %40 = vector.broadcast %c0_i32_20 : i32 to vector<16x128xi32>
    %41 = arith.cmpi eq, %0, %40 : vector<16x128xi32>
    %cst_21 = arith.constant 0.000000e+00 : f32
    %42 = vector.broadcast %cst_21 : f32 to vector<16x128xf32>
    %43 = arith.select %41, %42, %38 : vector<16x128xi1>, vector<16x128xf32>
    %c15_i32_22 = arith.constant 15 : i32
    %44 = vector.broadcast %c15_i32_22 : i32 to vector<16x128xi32>
    %45 = arith.cmpi eq, %0, %44 : vector<16x128xi32>
    %cst_23 = arith.constant 0.000000e+00 : f32
    %46 = vector.broadcast %cst_23 : f32 to vector<16x128xf32>
    %47 = arith.select %45, %46, %39 : vector<16x128xi1>, vector<16x128xf32>
    %c0_24 = arith.constant 0 : index
    %c0_25 = arith.constant 0 : index
    %48 = vector.load %arg1[%c0_24, %c0_25] : memref<16x128xf32, #tpu.memory_space<vmem>>, vector<16x128xf32>
    %c1_i32_26 = arith.constant 1 : i32
    %49 = tpu.dynamic_rotate %48 by %c1_i32_26 dim 1 : vector<16x128xf32>, i32 -> vector<16x128xf32>
    %c127_i32_27 = arith.constant 127 : i32
    %50 = tpu.dynamic_rotate %48 by %c127_i32_27 dim 1 : vector<16x128xf32>, i32 -> vector<16x128xf32>
    %c0_i32_28 = arith.constant 0 : i32
    %51 = vector.broadcast %c0_i32_28 : i32 to vector<16x128xi32>
    %52 = arith.cmpi eq, %1, %51 : vector<16x128xi32>
    %cst_29 = arith.constant 0.000000e+00 : f32
    %53 = vector.broadcast %cst_29 : f32 to vector<16x128xf32>
    %54 = arith.select %52, %53, %49 : vector<16x128xi1>, vector<16x128xf32>
    %c15_i32_30 = arith.constant 15 : i32
    %55 = vector.broadcast %c15_i32_30 : i32 to vector<16x128xi32>
    %56 = arith.cmpi eq, %1, %55 : vector<16x128xi32>
    %cst_31 = arith.constant 0.000000e+00 : f32
    %57 = vector.broadcast %cst_31 : f32 to vector<16x128xf32>
    %58 = arith.select %56, %57, %50 : vector<16x128xi1>, vector<16x128xf32>
    %c1_i32_32 = arith.constant 1 : i32
    %59 = tpu.dynamic_rotate %48 by %c1_i32_32 dim 0 : vector<16x128xf32>, i32 -> vector<16x128xf32>
    %c15_i32_33 = arith.constant 15 : i32
    %60 = tpu.dynamic_rotate %48 by %c15_i32_33 dim 0 : vector<16x128xf32>, i32 -> vector<16x128xf32>
    %c0_i32_34 = arith.constant 0 : i32
    %61 = vector.broadcast %c0_i32_34 : i32 to vector<16x128xi32>
    %62 = arith.cmpi eq, %0, %61 : vector<16x128xi32>
    %cst_35 = arith.constant 0.000000e+00 : f32
    %63 = vector.broadcast %cst_35 : f32 to vector<16x128xf32>
    %64 = arith.select %62, %63, %59 : vector<16x128xi1>, vector<16x128xf32>
    %c15_i32_36 = arith.constant 15 : i32
    %65 = vector.broadcast %c15_i32_36 : i32 to vector<16x128xi32>
    %66 = arith.cmpi eq, %0, %65 : vector<16x128xi32>
    %cst_37 = arith.constant 0.000000e+00 : f32
    %67 = vector.broadcast %cst_37 : f32 to vector<16x128xf32>
    %68 = arith.select %66, %67, %60 : vector<16x128xi1>, vector<16x128xf32>
    %c0_38 = arith.constant 0 : index
    %c0_39 = arith.constant 0 : index
    %69 = vector.load %arg0[%c0_38, %c0_39] : memref<16x128xf32, #tpu.memory_space<vmem>>, vector<16x128xf32>
    %c0_40 = arith.constant 0 : index
    %c0_41 = arith.constant 0 : index
    %70 = vector.load %arg1[%c0_40, %c0_41] : memref<16x128xf32, #tpu.memory_space<vmem>>, vector<16x128xf32>
    %71 = arith.subf %37, %33 : vector<16x128xf32>
    %cst_42 = arith.constant 5.000000e-01 : f32
    %72 = vector.broadcast %cst_42 : f32 to vector<16x128xf32>
    %73 = arith.mulf %71, %72 : vector<16x128xf32>
    %74 = arith.subf %47, %43 : vector<16x128xf32>
    %cst_43 = arith.constant 5.000000e-01 : f32
    %75 = vector.broadcast %cst_43 : f32 to vector<16x128xf32>
    %76 = arith.mulf %74, %75 : vector<16x128xf32>
    %77 = arith.addf %43, %47 : vector<16x128xf32>
    %78 = arith.addf %77, %33 : vector<16x128xf32>
    %79 = arith.addf %78, %37 : vector<16x128xf32>
    %cst_44 = arith.constant 4.000000e+00 : f32
    %80 = vector.broadcast %cst_44 : f32 to vector<16x128xf32>
    %81 = arith.mulf %80, %69 : vector<16x128xf32>
    %82 = arith.subf %79, %81 : vector<16x128xf32>
    %cst_45 = arith.constant 1.000000e+00 : f32
    %83 = vector.broadcast %cst_45 : f32 to vector<16x128xf32>
    %84 = arith.mulf %82, %83 : vector<16x128xf32>
    %85 = arith.subf %58, %54 : vector<16x128xf32>
    %cst_46 = arith.constant 5.000000e-01 : f32
    %86 = vector.broadcast %cst_46 : f32 to vector<16x128xf32>
    %87 = arith.mulf %85, %86 : vector<16x128xf32>
    %88 = arith.subf %68, %64 : vector<16x128xf32>
    %cst_47 = arith.constant 5.000000e-01 : f32
    %89 = vector.broadcast %cst_47 : f32 to vector<16x128xf32>
    %90 = arith.mulf %88, %89 : vector<16x128xf32>
    %91 = arith.addf %64, %68 : vector<16x128xf32>
    %92 = arith.addf %91, %54 : vector<16x128xf32>
    %93 = arith.addf %92, %58 : vector<16x128xf32>
    %cst_48 = arith.constant 4.000000e+00 : f32
    %94 = vector.broadcast %cst_48 : f32 to vector<16x128xf32>
    %95 = arith.mulf %94, %70 : vector<16x128xf32>
    %96 = arith.subf %93, %95 : vector<16x128xf32>
    %cst_49 = arith.constant 1.000000e+00 : f32
    %97 = vector.broadcast %cst_49 : f32 to vector<16x128xf32>
    %98 = arith.mulf %96, %97 : vector<16x128xf32>
    %99 = math.absf %69 : vector<16x128xf32>
    %cst_50 = arith.constant 1.000000e+00 : f32
    %100 = vector.broadcast %cst_50 : f32 to vector<16x128xf32>
    %101 = arith.mulf %99, %100 : vector<16x128xf32>
    %102 = math.absf %70 : vector<16x128xf32>
    %cst_51 = arith.constant 1.000000e+00 : f32
    %103 = vector.broadcast %cst_51 : f32 to vector<16x128xf32>
    %104 = arith.mulf %102, %103 : vector<16x128xf32>
    %105 = arith.addf %101, %104 : vector<16x128xf32>
    %cst_52 = arith.constant 5.000000e-01 : f32
    %106 = vector.broadcast %cst_52 : f32 to vector<16x128xf32>
    %107 = arith.mulf %106, %105 : vector<16x128xf32>
    %108 = math.absf %73 : vector<16x128xf32>
    %109 = math.absf %76 : vector<16x128xf32>
    %110 = arith.addf %108, %109 : vector<16x128xf32>
    %cst_53 = arith.constant 5.000000e-01 : f32
    %111 = vector.broadcast %cst_53 : f32 to vector<16x128xf32>
    %112 = arith.mulf %110, %111 : vector<16x128xf32>
    %cst_54 = arith.constant 1.000000e-03 : f32
    %113 = vector.broadcast %cst_54 : f32 to vector<16x128xf32>
    %114 = arith.addf %113, %112 : vector<16x128xf32>
    %115 = math.absf %87 : vector<16x128xf32>
    %116 = math.absf %90 : vector<16x128xf32>
    %117 = arith.addf %115, %116 : vector<16x128xf32>
    %cst_55 = arith.constant 5.000000e-01 : f32
    %118 = vector.broadcast %cst_55 : f32 to vector<16x128xf32>
    %119 = arith.mulf %117, %118 : vector<16x128xf32>
    %cst_56 = arith.constant 1.000000e-03 : f32
    %120 = vector.broadcast %cst_56 : f32 to vector<16x128xf32>
    %121 = arith.addf %120, %119 : vector<16x128xf32>
    %c0_57 = arith.constant 0 : index
    %c0_58 = arith.constant 0 : index
    %122 = vector.load %arg3[%c0_57, %c0_58] : memref<16x128xf32, #tpu.memory_space<vmem>>, vector<16x128xf32>
    %123 = arith.mulf %107, %84 : vector<16x128xf32>
    %124 = math.absf %123 : vector<16x128xf32>
    %cst_59 = arith.constant 2.500000e-01 : f32
    %125 = vector.broadcast %cst_59 : f32 to vector<16x128xf32>
    %126 = arith.mulf %125, %124 : vector<16x128xf32>
    %127 = tpu.reciprocal %114 {approx = true} : vector<16x128xf32> -> vector<16x128xf32>
    %128 = arith.mulf %126, %127 : vector<16x128xf32>
    %129 = arith.minimumf %128, %122 : vector<16x128xf32>
    %130 = arith.mulf %107, %98 : vector<16x128xf32>
    %131 = math.absf %130 : vector<16x128xf32>
    %cst_60 = arith.constant 2.500000e-01 : f32
    %132 = vector.broadcast %cst_60 : f32 to vector<16x128xf32>
    %133 = arith.mulf %132, %131 : vector<16x128xf32>
    %134 = tpu.reciprocal %121 {approx = true} : vector<16x128xf32> -> vector<16x128xf32>
    %135 = arith.mulf %133, %134 : vector<16x128xf32>
    %136 = arith.minimumf %135, %122 : vector<16x128xf32>
    %c1_i32_61 = arith.constant 1 : i32
    %137 = tpu.dynamic_rotate %129 by %c1_i32_61 dim 1 : vector<16x128xf32>, i32 -> vector<16x128xf32>
    %c127_i32_62 = arith.constant 127 : i32
    %138 = tpu.dynamic_rotate %129 by %c127_i32_62 dim 1 : vector<16x128xf32>, i32 -> vector<16x128xf32>
    %c0_i32_63 = arith.constant 0 : i32
    %139 = vector.broadcast %c0_i32_63 : i32 to vector<16x128xi32>
    %140 = arith.cmpi eq, %1, %139 : vector<16x128xi32>
    %cst_64 = arith.constant 0.000000e+00 : f32
    %141 = vector.broadcast %cst_64 : f32 to vector<16x128xf32>
    %142 = arith.select %140, %141, %137 : vector<16x128xi1>, vector<16x128xf32>
    %c15_i32_65 = arith.constant 15 : i32
    %143 = vector.broadcast %c15_i32_65 : i32 to vector<16x128xi32>
    %144 = arith.cmpi eq, %1, %143 : vector<16x128xi32>
    %cst_66 = arith.constant 0.000000e+00 : f32
    %145 = vector.broadcast %cst_66 : f32 to vector<16x128xf32>
    %146 = arith.select %144, %145, %138 : vector<16x128xi1>, vector<16x128xf32>
    %c1_i32_67 = arith.constant 1 : i32
    %147 = tpu.dynamic_rotate %129 by %c1_i32_67 dim 0 : vector<16x128xf32>, i32 -> vector<16x128xf32>
    %c15_i32_68 = arith.constant 15 : i32
    %148 = tpu.dynamic_rotate %129 by %c15_i32_68 dim 0 : vector<16x128xf32>, i32 -> vector<16x128xf32>
    %c0_i32_69 = arith.constant 0 : i32
    %149 = vector.broadcast %c0_i32_69 : i32 to vector<16x128xi32>
    %150 = arith.cmpi eq, %0, %149 : vector<16x128xi32>
    %cst_70 = arith.constant 0.000000e+00 : f32
    %151 = vector.broadcast %cst_70 : f32 to vector<16x128xf32>
    %152 = arith.select %150, %151, %147 : vector<16x128xi1>, vector<16x128xf32>
    %c15_i32_71 = arith.constant 15 : i32
    %153 = vector.broadcast %c15_i32_71 : i32 to vector<16x128xi32>
    %154 = arith.cmpi eq, %0, %153 : vector<16x128xi32>
    %cst_72 = arith.constant 0.000000e+00 : f32
    %155 = vector.broadcast %cst_72 : f32 to vector<16x128xf32>
    %156 = arith.select %154, %155, %148 : vector<16x128xi1>, vector<16x128xf32>
    %c1_i32_73 = arith.constant 1 : i32
    %157 = tpu.dynamic_rotate %136 by %c1_i32_73 dim 1 : vector<16x128xf32>, i32 -> vector<16x128xf32>
    %c127_i32_74 = arith.constant 127 : i32
    %158 = tpu.dynamic_rotate %136 by %c127_i32_74 dim 1 : vector<16x128xf32>, i32 -> vector<16x128xf32>
    %c0_i32_75 = arith.constant 0 : i32
    %159 = vector.broadcast %c0_i32_75 : i32 to vector<16x128xi32>
    %160 = arith.cmpi eq, %1, %159 : vector<16x128xi32>
    %cst_76 = arith.constant 0.000000e+00 : f32
    %161 = vector.broadcast %cst_76 : f32 to vector<16x128xf32>
    %162 = arith.select %160, %161, %157 : vector<16x128xi1>, vector<16x128xf32>
    %c15_i32_77 = arith.constant 15 : i32
    %163 = vector.broadcast %c15_i32_77 : i32 to vector<16x128xi32>
    %164 = arith.cmpi eq, %1, %163 : vector<16x128xi32>
    %cst_78 = arith.constant 0.000000e+00 : f32
    %165 = vector.broadcast %cst_78 : f32 to vector<16x128xf32>
    %166 = arith.select %164, %165, %158 : vector<16x128xi1>, vector<16x128xf32>
    %c1_i32_79 = arith.constant 1 : i32
    %167 = tpu.dynamic_rotate %136 by %c1_i32_79 dim 0 : vector<16x128xf32>, i32 -> vector<16x128xf32>
    %c15_i32_80 = arith.constant 15 : i32
    %168 = tpu.dynamic_rotate %136 by %c15_i32_80 dim 0 : vector<16x128xf32>, i32 -> vector<16x128xf32>
    %c0_i32_81 = arith.constant 0 : i32
    %169 = vector.broadcast %c0_i32_81 : i32 to vector<16x128xi32>
    %170 = arith.cmpi eq, %0, %169 : vector<16x128xi32>
    %cst_82 = arith.constant 0.000000e+00 : f32
    %171 = vector.broadcast %cst_82 : f32 to vector<16x128xf32>
    %172 = arith.select %170, %171, %167 : vector<16x128xi1>, vector<16x128xf32>
    %c15_i32_83 = arith.constant 15 : i32
    %173 = vector.broadcast %c15_i32_83 : i32 to vector<16x128xi32>
    %174 = arith.cmpi eq, %0, %173 : vector<16x128xi32>
    %cst_84 = arith.constant 0.000000e+00 : f32
    %175 = vector.broadcast %cst_84 : f32 to vector<16x128xf32>
    %176 = arith.select %174, %175, %168 : vector<16x128xi1>, vector<16x128xf32>
    %c0_85 = arith.constant 0 : index
    %c0_86 = arith.constant 0 : index
    %177 = vector.load %arg0[%c0_85, %c0_86] : memref<16x128xf32, #tpu.memory_space<vmem>>, vector<16x128xf32>
    %c0_87 = arith.constant 0 : index
    %c0_88 = arith.constant 0 : index
    %178 = vector.load %arg1[%c0_87, %c0_88] : memref<16x128xf32, #tpu.memory_space<vmem>>, vector<16x128xf32>
    %179 = arith.addf %152, %156 : vector<16x128xf32>
    %180 = arith.addf %179, %142 : vector<16x128xf32>
    %181 = arith.addf %180, %146 : vector<16x128xf32>
    %cst_89 = arith.constant 4.000000e+00 : f32
    %182 = vector.broadcast %cst_89 : f32 to vector<16x128xf32>
    %183 = arith.mulf %182, %129 : vector<16x128xf32>
    %184 = arith.subf %181, %183 : vector<16x128xf32>
    %cst_90 = arith.constant 1.000000e+00 : f32
    %185 = vector.broadcast %cst_90 : f32 to vector<16x128xf32>
    %186 = arith.mulf %184, %185 : vector<16x128xf32>
    %187 = arith.addf %172, %176 : vector<16x128xf32>
    %188 = arith.addf %187, %162 : vector<16x128xf32>
    %189 = arith.addf %188, %166 : vector<16x128xf32>
    %cst_91 = arith.constant 4.000000e+00 : f32
    %190 = vector.broadcast %cst_91 : f32 to vector<16x128xf32>
    %191 = arith.mulf %190, %136 : vector<16x128xf32>
    %192 = arith.subf %189, %191 : vector<16x128xf32>
    %cst_92 = arith.constant 1.000000e+00 : f32
    %193 = vector.broadcast %cst_92 : f32 to vector<16x128xf32>
    %194 = arith.mulf %192, %193 : vector<16x128xf32>
    %195 = arith.mulf %43, %152 : vector<16x128xf32>
    %196 = arith.mulf %47, %156 : vector<16x128xf32>
    %197 = arith.addf %195, %196 : vector<16x128xf32>
    %198 = arith.mulf %33, %142 : vector<16x128xf32>
    %199 = arith.addf %197, %198 : vector<16x128xf32>
    %200 = arith.mulf %37, %146 : vector<16x128xf32>
    %201 = arith.addf %199, %200 : vector<16x128xf32>
    %202 = arith.mulf %177, %129 : vector<16x128xf32>
    %cst_93 = arith.constant 4.000000e+00 : f32
    %203 = vector.broadcast %cst_93 : f32 to vector<16x128xf32>
    %204 = arith.mulf %203, %202 : vector<16x128xf32>
    %205 = arith.subf %201, %204 : vector<16x128xf32>
    %cst_94 = arith.constant 1.000000e+00 : f32
    %206 = vector.broadcast %cst_94 : f32 to vector<16x128xf32>
    %207 = arith.mulf %205, %206 : vector<16x128xf32>
    %208 = arith.mulf %64, %172 : vector<16x128xf32>
    %209 = arith.mulf %68, %176 : vector<16x128xf32>
    %210 = arith.addf %208, %209 : vector<16x128xf32>
    %211 = arith.mulf %54, %162 : vector<16x128xf32>
    %212 = arith.addf %210, %211 : vector<16x128xf32>
    %213 = arith.mulf %58, %166 : vector<16x128xf32>
    %214 = arith.addf %212, %213 : vector<16x128xf32>
    %215 = arith.mulf %178, %136 : vector<16x128xf32>
    %cst_95 = arith.constant 4.000000e+00 : f32
    %216 = vector.broadcast %cst_95 : f32 to vector<16x128xf32>
    %217 = arith.mulf %216, %215 : vector<16x128xf32>
    %218 = arith.subf %214, %217 : vector<16x128xf32>
    %cst_96 = arith.constant 1.000000e+00 : f32
    %219 = vector.broadcast %cst_96 : f32 to vector<16x128xf32>
    %220 = arith.mulf %218, %219 : vector<16x128xf32>
    %221 = arith.mulf %129, %84 : vector<16x128xf32>
    %222 = arith.addf %221, %207 : vector<16x128xf32>
    %223 = arith.mulf %69, %186 : vector<16x128xf32>
    %224 = arith.subf %222, %223 : vector<16x128xf32>
    %cst_97 = arith.constant 1.500000e+00 : f32
    %225 = vector.broadcast %cst_97 : f32 to vector<16x128xf32>
    %226 = arith.mulf %225, %224 : vector<16x128xf32>
    %227 = arith.mulf %136, %98 : vector<16x128xf32>
    %228 = arith.addf %227, %220 : vector<16x128xf32>
    %229 = arith.mulf %70, %194 : vector<16x128xf32>
    %230 = arith.subf %228, %229 : vector<16x128xf32>
    %cst_98 = arith.constant 1.500000e+00 : f32
    %231 = vector.broadcast %cst_98 : f32 to vector<16x128xf32>
    %232 = arith.mulf %231, %230 : vector<16x128xf32>
    %cst_99 = arith.constant 1.000000e+00 : f32
    %233 = vector.broadcast %cst_99 : f32 to vector<16x128xf32>
    %234 = arith.mulf %233, %226 : vector<16x128xf32>
    %235 = arith.mulf %69, %73 : vector<16x128xf32>
    %236 = arith.subf %234, %235 : vector<16x128xf32>
    %237 = arith.mulf %70, %76 : vector<16x128xf32>
    %238 = arith.subf %236, %237 : vector<16x128xf32>
    %cst_100 = arith.constant 5.000000e-03 : f32
    %239 = vector.broadcast %cst_100 : f32 to vector<16x128xf32>
    %240 = arith.mulf %239, %238 : vector<16x128xf32>
    %241 = arith.addf %177, %240 : vector<16x128xf32>
    %c0_101 = arith.constant 0 : index
    %c0_102 = arith.constant 0 : index
    %242 = vector.load %arg9[%c0_101, %c0_102] : memref<16x128xf32, #tpu.memory_space<vmem>>, vector<16x128xf32>
    %243 = arith.subf %241, %242 : vector<16x128xf32>
    %cst_103 = arith.constant 1.000000e+00 : f32
    %244 = vector.broadcast %cst_103 : f32 to vector<16x128xf32>
    %245 = arith.mulf %244, %232 : vector<16x128xf32>
    %246 = arith.mulf %69, %87 : vector<16x128xf32>
    %247 = arith.subf %245, %246 : vector<16x128xf32>
    %248 = arith.mulf %70, %90 : vector<16x128xf32>
    %249 = arith.subf %247, %248 : vector<16x128xf32>
    %cst_104 = arith.constant 5.000000e-03 : f32
    %250 = vector.broadcast %cst_104 : f32 to vector<16x128xf32>
    %251 = arith.mulf %250, %249 : vector<16x128xf32>
    %252 = arith.addf %178, %251 : vector<16x128xf32>
    %c0_105 = arith.constant 0 : index
    %c0_106 = arith.constant 0 : index
    %253 = vector.load %arg10[%c0_105, %c0_106] : memref<16x128xf32, #tpu.memory_space<vmem>>, vector<16x128xf32>
    %254 = arith.subf %252, %253 : vector<16x128xf32>
    %c1_i32_107 = arith.constant 1 : i32
    %255 = tpu.dynamic_rotate %243 by %c1_i32_107 dim 1 : vector<16x128xf32>, i32 -> vector<16x128xf32>
    %c127_i32_108 = arith.constant 127 : i32
    %256 = tpu.dynamic_rotate %243 by %c127_i32_108 dim 1 : vector<16x128xf32>, i32 -> vector<16x128xf32>
    %c0_i32_109 = arith.constant 0 : i32
    %257 = vector.broadcast %c0_i32_109 : i32 to vector<16x128xi32>
    %258 = arith.cmpi eq, %1, %257 : vector<16x128xi32>
    %cst_110 = arith.constant 0.000000e+00 : f32
    %259 = vector.broadcast %cst_110 : f32 to vector<16x128xf32>
    %260 = arith.select %258, %259, %255 : vector<16x128xi1>, vector<16x128xf32>
    %c15_i32_111 = arith.constant 15 : i32
    %261 = vector.broadcast %c15_i32_111 : i32 to vector<16x128xi32>
    %262 = arith.cmpi eq, %1, %261 : vector<16x128xi32>
    %cst_112 = arith.constant 0.000000e+00 : f32
    %263 = vector.broadcast %cst_112 : f32 to vector<16x128xf32>
    %264 = arith.select %262, %263, %256 : vector<16x128xi1>, vector<16x128xf32>
    %c1_i32_113 = arith.constant 1 : i32
    %265 = tpu.dynamic_rotate %243 by %c1_i32_113 dim 0 : vector<16x128xf32>, i32 -> vector<16x128xf32>
    %c15_i32_114 = arith.constant 15 : i32
    %266 = tpu.dynamic_rotate %243 by %c15_i32_114 dim 0 : vector<16x128xf32>, i32 -> vector<16x128xf32>
    %c0_i32_115 = arith.constant 0 : i32
    %267 = vector.broadcast %c0_i32_115 : i32 to vector<16x128xi32>
    %268 = arith.cmpi eq, %0, %267 : vector<16x128xi32>
    %cst_116 = arith.constant 0.000000e+00 : f32
    %269 = vector.broadcast %cst_116 : f32 to vector<16x128xf32>
    %270 = arith.select %268, %269, %265 : vector<16x128xi1>, vector<16x128xf32>
    %c15_i32_117 = arith.constant 15 : i32
    %271 = vector.broadcast %c15_i32_117 : i32 to vector<16x128xi32>
    %272 = arith.cmpi eq, %0, %271 : vector<16x128xi32>
    %cst_118 = arith.constant 0.000000e+00 : f32
    %273 = vector.broadcast %cst_118 : f32 to vector<16x128xf32>
    %274 = arith.select %272, %273, %266 : vector<16x128xi1>, vector<16x128xf32>
    %c1_i32_119 = arith.constant 1 : i32
    %275 = tpu.dynamic_rotate %254 by %c1_i32_119 dim 1 : vector<16x128xf32>, i32 -> vector<16x128xf32>
    %c127_i32_120 = arith.constant 127 : i32
    %276 = tpu.dynamic_rotate %254 by %c127_i32_120 dim 1 : vector<16x128xf32>, i32 -> vector<16x128xf32>
    %c0_i32_121 = arith.constant 0 : i32
    %277 = vector.broadcast %c0_i32_121 : i32 to vector<16x128xi32>
    %278 = arith.cmpi eq, %1, %277 : vector<16x128xi32>
    %cst_122 = arith.constant 0.000000e+00 : f32
    %279 = vector.broadcast %cst_122 : f32 to vector<16x128xf32>
    %280 = arith.select %278, %279, %275 : vector<16x128xi1>, vector<16x128xf32>
    %c15_i32_123 = arith.constant 15 : i32
    %281 = vector.broadcast %c15_i32_123 : i32 to vector<16x128xi32>
    %282 = arith.cmpi eq, %1, %281 : vector<16x128xi32>
    %cst_124 = arith.constant 0.000000e+00 : f32
    %283 = vector.broadcast %cst_124 : f32 to vector<16x128xf32>
    %284 = arith.select %282, %283, %276 : vector<16x128xi1>, vector<16x128xf32>
    %c1_i32_125 = arith.constant 1 : i32
    %285 = tpu.dynamic_rotate %254 by %c1_i32_125 dim 0 : vector<16x128xf32>, i32 -> vector<16x128xf32>
    %c15_i32_126 = arith.constant 15 : i32
    %286 = tpu.dynamic_rotate %254 by %c15_i32_126 dim 0 : vector<16x128xf32>, i32 -> vector<16x128xf32>
    %c0_i32_127 = arith.constant 0 : i32
    %287 = vector.broadcast %c0_i32_127 : i32 to vector<16x128xi32>
    %288 = arith.cmpi eq, %0, %287 : vector<16x128xi32>
    %cst_128 = arith.constant 0.000000e+00 : f32
    %289 = vector.broadcast %cst_128 : f32 to vector<16x128xf32>
    %290 = arith.select %288, %289, %285 : vector<16x128xi1>, vector<16x128xf32>
    %c15_i32_129 = arith.constant 15 : i32
    %291 = vector.broadcast %c15_i32_129 : i32 to vector<16x128xi32>
    %292 = arith.cmpi eq, %0, %291 : vector<16x128xi32>
    %cst_130 = arith.constant 0.000000e+00 : f32
    %293 = vector.broadcast %cst_130 : f32 to vector<16x128xf32>
    %294 = arith.select %292, %293, %286 : vector<16x128xi1>, vector<16x128xf32>
    %295 = arith.subf %264, %260 : vector<16x128xf32>
    %cst_131 = arith.constant 5.000000e-01 : f32
    %296 = vector.broadcast %cst_131 : f32 to vector<16x128xf32>
    %297 = arith.mulf %295, %296 : vector<16x128xf32>
    %298 = arith.subf %274, %270 : vector<16x128xf32>
    %cst_132 = arith.constant 5.000000e-01 : f32
    %299 = vector.broadcast %cst_132 : f32 to vector<16x128xf32>
    %300 = arith.mulf %298, %299 : vector<16x128xf32>
    %301 = arith.addf %270, %274 : vector<16x128xf32>
    %302 = arith.addf %301, %260 : vector<16x128xf32>
    %303 = arith.addf %302, %264 : vector<16x128xf32>
    %cst_133 = arith.constant 4.000000e+00 : f32
    %304 = vector.broadcast %cst_133 : f32 to vector<16x128xf32>
    %305 = arith.mulf %304, %243 : vector<16x128xf32>
    %306 = arith.subf %303, %305 : vector<16x128xf32>
    %cst_134 = arith.constant 1.000000e+00 : f32
    %307 = vector.broadcast %cst_134 : f32 to vector<16x128xf32>
    %308 = arith.mulf %306, %307 : vector<16x128xf32>
    %309 = arith.subf %284, %280 : vector<16x128xf32>
    %cst_135 = arith.constant 5.000000e-01 : f32
    %310 = vector.broadcast %cst_135 : f32 to vector<16x128xf32>
    %311 = arith.mulf %309, %310 : vector<16x128xf32>
    %312 = arith.subf %294, %290 : vector<16x128xf32>
    %cst_136 = arith.constant 5.000000e-01 : f32
    %313 = vector.broadcast %cst_136 : f32 to vector<16x128xf32>
    %314 = arith.mulf %312, %313 : vector<16x128xf32>
    %315 = arith.addf %290, %294 : vector<16x128xf32>
    %316 = arith.addf %315, %280 : vector<16x128xf32>
    %317 = arith.addf %316, %284 : vector<16x128xf32>
    %cst_137 = arith.constant 4.000000e+00 : f32
    %318 = vector.broadcast %cst_137 : f32 to vector<16x128xf32>
    %319 = arith.mulf %318, %254 : vector<16x128xf32>
    %320 = arith.subf %317, %319 : vector<16x128xf32>
    %cst_138 = arith.constant 1.000000e+00 : f32
    %321 = vector.broadcast %cst_138 : f32 to vector<16x128xf32>
    %322 = arith.mulf %320, %321 : vector<16x128xf32>
    %323 = math.absf %243 : vector<16x128xf32>
    %cst_139 = arith.constant 1.000000e+00 : f32
    %324 = vector.broadcast %cst_139 : f32 to vector<16x128xf32>
    %325 = arith.mulf %323, %324 : vector<16x128xf32>
    %326 = math.absf %254 : vector<16x128xf32>
    %cst_140 = arith.constant 1.000000e+00 : f32
    %327 = vector.broadcast %cst_140 : f32 to vector<16x128xf32>
    %328 = arith.mulf %326, %327 : vector<16x128xf32>
    %329 = arith.addf %325, %328 : vector<16x128xf32>
    %cst_141 = arith.constant 5.000000e-01 : f32
    %330 = vector.broadcast %cst_141 : f32 to vector<16x128xf32>
    %331 = arith.mulf %330, %329 : vector<16x128xf32>
    %332 = math.absf %297 : vector<16x128xf32>
    %333 = math.absf %300 : vector<16x128xf32>
    %334 = arith.addf %332, %333 : vector<16x128xf32>
    %cst_142 = arith.constant 5.000000e-01 : f32
    %335 = vector.broadcast %cst_142 : f32 to vector<16x128xf32>
    %336 = arith.mulf %334, %335 : vector<16x128xf32>
    %cst_143 = arith.constant 1.000000e-03 : f32
    %337 = vector.broadcast %cst_143 : f32 to vector<16x128xf32>
    %338 = arith.addf %337, %336 : vector<16x128xf32>
    %339 = math.absf %311 : vector<16x128xf32>
    %340 = math.absf %314 : vector<16x128xf32>
    %341 = arith.addf %339, %340 : vector<16x128xf32>
    %cst_144 = arith.constant 5.000000e-01 : f32
    %342 = vector.broadcast %cst_144 : f32 to vector<16x128xf32>
    %343 = arith.mulf %341, %342 : vector<16x128xf32>
    %cst_145 = arith.constant 1.000000e-03 : f32
    %344 = vector.broadcast %cst_145 : f32 to vector<16x128xf32>
    %345 = arith.addf %344, %343 : vector<16x128xf32>
    %c0_146 = arith.constant 0 : index
    %c0_147 = arith.constant 0 : index
    %346 = vector.load %arg3[%c0_146, %c0_147] : memref<16x128xf32, #tpu.memory_space<vmem>>, vector<16x128xf32>
    %347 = arith.mulf %331, %308 : vector<16x128xf32>
    %348 = math.absf %347 : vector<16x128xf32>
    %cst_148 = arith.constant 2.500000e-01 : f32
    %349 = vector.broadcast %cst_148 : f32 to vector<16x128xf32>
    %350 = arith.mulf %349, %348 : vector<16x128xf32>
    %351 = tpu.reciprocal %338 {approx = true} : vector<16x128xf32> -> vector<16x128xf32>
    %352 = arith.mulf %350, %351 : vector<16x128xf32>
    %353 = arith.minimumf %352, %346 : vector<16x128xf32>
    %354 = arith.mulf %331, %322 : vector<16x128xf32>
    %355 = math.absf %354 : vector<16x128xf32>
    %cst_149 = arith.constant 2.500000e-01 : f32
    %356 = vector.broadcast %cst_149 : f32 to vector<16x128xf32>
    %357 = arith.mulf %356, %355 : vector<16x128xf32>
    %358 = tpu.reciprocal %345 {approx = true} : vector<16x128xf32> -> vector<16x128xf32>
    %359 = arith.mulf %357, %358 : vector<16x128xf32>
    %360 = arith.minimumf %359, %346 : vector<16x128xf32>
    %c1_i32_150 = arith.constant 1 : i32
    %361 = tpu.dynamic_rotate %353 by %c1_i32_150 dim 1 : vector<16x128xf32>, i32 -> vector<16x128xf32>
    %c127_i32_151 = arith.constant 127 : i32
    %362 = tpu.dynamic_rotate %353 by %c127_i32_151 dim 1 : vector<16x128xf32>, i32 -> vector<16x128xf32>
    %c0_i32_152 = arith.constant 0 : i32
    %363 = vector.broadcast %c0_i32_152 : i32 to vector<16x128xi32>
    %364 = arith.cmpi eq, %1, %363 : vector<16x128xi32>
    %cst_153 = arith.constant 0.000000e+00 : f32
    %365 = vector.broadcast %cst_153 : f32 to vector<16x128xf32>
    %366 = arith.select %364, %365, %361 : vector<16x128xi1>, vector<16x128xf32>
    %c15_i32_154 = arith.constant 15 : i32
    %367 = vector.broadcast %c15_i32_154 : i32 to vector<16x128xi32>
    %368 = arith.cmpi eq, %1, %367 : vector<16x128xi32>
    %cst_155 = arith.constant 0.000000e+00 : f32
    %369 = vector.broadcast %cst_155 : f32 to vector<16x128xf32>
    %370 = arith.select %368, %369, %362 : vector<16x128xi1>, vector<16x128xf32>
    %c1_i32_156 = arith.constant 1 : i32
    %371 = tpu.dynamic_rotate %353 by %c1_i32_156 dim 0 : vector<16x128xf32>, i32 -> vector<16x128xf32>
    %c15_i32_157 = arith.constant 15 : i32
    %372 = tpu.dynamic_rotate %353 by %c15_i32_157 dim 0 : vector<16x128xf32>, i32 -> vector<16x128xf32>
    %c0_i32_158 = arith.constant 0 : i32
    %373 = vector.broadcast %c0_i32_158 : i32 to vector<16x128xi32>
    %374 = arith.cmpi eq, %0, %373 : vector<16x128xi32>
    %cst_159 = arith.constant 0.000000e+00 : f32
    %375 = vector.broadcast %cst_159 : f32 to vector<16x128xf32>
    %376 = arith.select %374, %375, %371 : vector<16x128xi1>, vector<16x128xf32>
    %c15_i32_160 = arith.constant 15 : i32
    %377 = vector.broadcast %c15_i32_160 : i32 to vector<16x128xi32>
    %378 = arith.cmpi eq, %0, %377 : vector<16x128xi32>
    %cst_161 = arith.constant 0.000000e+00 : f32
    %379 = vector.broadcast %cst_161 : f32 to vector<16x128xf32>
    %380 = arith.select %378, %379, %372 : vector<16x128xi1>, vector<16x128xf32>
    %c1_i32_162 = arith.constant 1 : i32
    %381 = tpu.dynamic_rotate %360 by %c1_i32_162 dim 1 : vector<16x128xf32>, i32 -> vector<16x128xf32>
    %c127_i32_163 = arith.constant 127 : i32
    %382 = tpu.dynamic_rotate %360 by %c127_i32_163 dim 1 : vector<16x128xf32>, i32 -> vector<16x128xf32>
    %c0_i32_164 = arith.constant 0 : i32
    %383 = vector.broadcast %c0_i32_164 : i32 to vector<16x128xi32>
    %384 = arith.cmpi eq, %1, %383 : vector<16x128xi32>
    %cst_165 = arith.constant 0.000000e+00 : f32
    %385 = vector.broadcast %cst_165 : f32 to vector<16x128xf32>
    %386 = arith.select %384, %385, %381 : vector<16x128xi1>, vector<16x128xf32>
    %c15_i32_166 = arith.constant 15 : i32
    %387 = vector.broadcast %c15_i32_166 : i32 to vector<16x128xi32>
    %388 = arith.cmpi eq, %1, %387 : vector<16x128xi32>
    %cst_167 = arith.constant 0.000000e+00 : f32
    %389 = vector.broadcast %cst_167 : f32 to vector<16x128xf32>
    %390 = arith.select %388, %389, %382 : vector<16x128xi1>, vector<16x128xf32>
    %c1_i32_168 = arith.constant 1 : i32
    %391 = tpu.dynamic_rotate %360 by %c1_i32_168 dim 0 : vector<16x128xf32>, i32 -> vector<16x128xf32>
    %c15_i32_169 = arith.constant 15 : i32
    %392 = tpu.dynamic_rotate %360 by %c15_i32_169 dim 0 : vector<16x128xf32>, i32 -> vector<16x128xf32>
    %c0_i32_170 = arith.constant 0 : i32
    %393 = vector.broadcast %c0_i32_170 : i32 to vector<16x128xi32>
    %394 = arith.cmpi eq, %0, %393 : vector<16x128xi32>
    %cst_171 = arith.constant 0.000000e+00 : f32
    %395 = vector.broadcast %cst_171 : f32 to vector<16x128xf32>
    %396 = arith.select %394, %395, %391 : vector<16x128xi1>, vector<16x128xf32>
    %c15_i32_172 = arith.constant 15 : i32
    %397 = vector.broadcast %c15_i32_172 : i32 to vector<16x128xi32>
    %398 = arith.cmpi eq, %0, %397 : vector<16x128xi32>
    %cst_173 = arith.constant 0.000000e+00 : f32
    %399 = vector.broadcast %cst_173 : f32 to vector<16x128xf32>
    %400 = arith.select %398, %399, %392 : vector<16x128xi1>, vector<16x128xf32>
    %c0_174 = arith.constant 0 : index
    %c0_175 = arith.constant 0 : index
    %401 = vector.load %arg0[%c0_174, %c0_175] : memref<16x128xf32, #tpu.memory_space<vmem>>, vector<16x128xf32>
    %c0_176 = arith.constant 0 : index
    %c0_177 = arith.constant 0 : index
    %402 = vector.load %arg1[%c0_176, %c0_177] : memref<16x128xf32, #tpu.memory_space<vmem>>, vector<16x128xf32>
    %403 = arith.addf %376, %380 : vector<16x128xf32>
    %404 = arith.addf %403, %366 : vector<16x128xf32>
    %405 = arith.addf %404, %370 : vector<16x128xf32>
    %cst_178 = arith.constant 4.000000e+00 : f32
    %406 = vector.broadcast %cst_178 : f32 to vector<16x128xf32>
    %407 = arith.mulf %406, %353 : vector<16x128xf32>
    %408 = arith.subf %405, %407 : vector<16x128xf32>
    %cst_179 = arith.constant 1.000000e+00 : f32
    %409 = vector.broadcast %cst_179 : f32 to vector<16x128xf32>
    %410 = arith.mulf %408, %409 : vector<16x128xf32>
    %411 = arith.addf %396, %400 : vector<16x128xf32>
    %412 = arith.addf %411, %386 : vector<16x128xf32>
    %413 = arith.addf %412, %390 : vector<16x128xf32>
    %cst_180 = arith.constant 4.000000e+00 : f32
    %414 = vector.broadcast %cst_180 : f32 to vector<16x128xf32>
    %415 = arith.mulf %414, %360 : vector<16x128xf32>
    %416 = arith.subf %413, %415 : vector<16x128xf32>
    %cst_181 = arith.constant 1.000000e+00 : f32
    %417 = vector.broadcast %cst_181 : f32 to vector<16x128xf32>
    %418 = arith.mulf %416, %417 : vector<16x128xf32>
    %419 = arith.mulf %43, %376 : vector<16x128xf32>
    %420 = arith.mulf %47, %380 : vector<16x128xf32>
    %421 = arith.addf %419, %420 : vector<16x128xf32>
    %422 = arith.mulf %33, %366 : vector<16x128xf32>
    %423 = arith.addf %421, %422 : vector<16x128xf32>
    %424 = arith.mulf %37, %370 : vector<16x128xf32>
    %425 = arith.addf %423, %424 : vector<16x128xf32>
    %426 = arith.mulf %401, %353 : vector<16x128xf32>
    %cst_182 = arith.constant 4.000000e+00 : f32
    %427 = vector.broadcast %cst_182 : f32 to vector<16x128xf32>
    %428 = arith.mulf %427, %426 : vector<16x128xf32>
    %429 = arith.subf %425, %428 : vector<16x128xf32>
    %cst_183 = arith.constant 1.000000e+00 : f32
    %430 = vector.broadcast %cst_183 : f32 to vector<16x128xf32>
    %431 = arith.mulf %429, %430 : vector<16x128xf32>
    %432 = arith.mulf %64, %396 : vector<16x128xf32>
    %433 = arith.mulf %68, %400 : vector<16x128xf32>
    %434 = arith.addf %432, %433 : vector<16x128xf32>
    %435 = arith.mulf %54, %386 : vector<16x128xf32>
    %436 = arith.addf %434, %435 : vector<16x128xf32>
    %437 = arith.mulf %58, %390 : vector<16x128xf32>
    %438 = arith.addf %436, %437 : vector<16x128xf32>
    %439 = arith.mulf %402, %360 : vector<16x128xf32>
    %cst_184 = arith.constant 4.000000e+00 : f32
    %440 = vector.broadcast %cst_184 : f32 to vector<16x128xf32>
    %441 = arith.mulf %440, %439 : vector<16x128xf32>
    %442 = arith.subf %438, %441 : vector<16x128xf32>
    %cst_185 = arith.constant 1.000000e+00 : f32
    %443 = vector.broadcast %cst_185 : f32 to vector<16x128xf32>
    %444 = arith.mulf %442, %443 : vector<16x128xf32>
    %445 = arith.mulf %353, %308 : vector<16x128xf32>
    %446 = arith.addf %445, %431 : vector<16x128xf32>
    %447 = arith.mulf %243, %410 : vector<16x128xf32>
    %448 = arith.subf %446, %447 : vector<16x128xf32>
    %cst_186 = arith.constant 1.500000e+00 : f32
    %449 = vector.broadcast %cst_186 : f32 to vector<16x128xf32>
    %450 = arith.mulf %449, %448 : vector<16x128xf32>
    %451 = arith.mulf %360, %322 : vector<16x128xf32>
    %452 = arith.addf %451, %444 : vector<16x128xf32>
    %453 = arith.mulf %254, %418 : vector<16x128xf32>
    %454 = arith.subf %452, %453 : vector<16x128xf32>
    %cst_187 = arith.constant 1.500000e+00 : f32
    %455 = vector.broadcast %cst_187 : f32 to vector<16x128xf32>
    %456 = arith.mulf %455, %454 : vector<16x128xf32>
    %cst_188 = arith.constant 1.000000e+00 : f32
    %457 = vector.broadcast %cst_188 : f32 to vector<16x128xf32>
    %458 = arith.mulf %457, %450 : vector<16x128xf32>
    %459 = arith.mulf %243, %297 : vector<16x128xf32>
    %460 = arith.subf %458, %459 : vector<16x128xf32>
    %461 = arith.mulf %254, %300 : vector<16x128xf32>
    %462 = arith.subf %460, %461 : vector<16x128xf32>
    %cst_189 = arith.constant 0.00999999977 : f32
    %463 = vector.broadcast %cst_189 : f32 to vector<16x128xf32>
    %464 = arith.mulf %463, %462 : vector<16x128xf32>
    %465 = arith.addf %401, %464 : vector<16x128xf32>
    %c0_190 = arith.constant 0 : index
    %c0_191 = arith.constant 0 : index
    %466 = vector.load %arg9[%c0_190, %c0_191] : memref<16x128xf32, #tpu.memory_space<vmem>>, vector<16x128xf32>
    %467 = arith.subf %465, %466 : vector<16x128xf32>
    %cst_192 = arith.constant 1.000000e+00 : f32
    %468 = vector.broadcast %cst_192 : f32 to vector<16x128xf32>
    %469 = arith.mulf %468, %456 : vector<16x128xf32>
    %470 = arith.mulf %243, %311 : vector<16x128xf32>
    %471 = arith.subf %469, %470 : vector<16x128xf32>
    %472 = arith.mulf %254, %314 : vector<16x128xf32>
    %473 = arith.subf %471, %472 : vector<16x128xf32>
    %cst_193 = arith.constant 0.00999999977 : f32
    %474 = vector.broadcast %cst_193 : f32 to vector<16x128xf32>
    %475 = arith.mulf %474, %473 : vector<16x128xf32>
    %476 = arith.addf %402, %475 : vector<16x128xf32>
    %c0_194 = arith.constant 0 : index
    %c0_195 = arith.constant 0 : index
    %477 = vector.load %arg10[%c0_194, %c0_195] : memref<16x128xf32, #tpu.memory_space<vmem>>, vector<16x128xf32>
    %478 = arith.subf %476, %477 : vector<16x128xf32>
    %c0_196 = arith.constant 0 : index
    %c0_197 = arith.constant 0 : index
    %479 = vector.load %arg4[%c0_196, %c0_197] : memref<16x128xf32, #tpu.memory_space<vmem>>, vector<16x128xf32>
    %cst_198 = arith.constant 0.00999999977 : f32
    %480 = vector.broadcast %cst_198 : f32 to vector<16x128xf32>
    %481 = arith.mulf %479, %480 : vector<16x128xf32>
    %482 = arith.subf %467, %481 : vector<16x128xf32>
    %c0_199 = arith.constant 0 : index
    %c0_200 = arith.constant 0 : index
    %483 = vector.load %arg5[%c0_199, %c0_200] : memref<16x128xf32, #tpu.memory_space<vmem>>, vector<16x128xf32>
    %cst_201 = arith.constant 0.00999999977 : f32
    %484 = vector.broadcast %cst_201 : f32 to vector<16x128xf32>
    %485 = arith.mulf %483, %484 : vector<16x128xf32>
    %486 = arith.subf %478, %485 : vector<16x128xf32>
    %c1_i32_202 = arith.constant 1 : i32
    %487 = tpu.dynamic_rotate %482 by %c1_i32_202 dim 1 : vector<16x128xf32>, i32 -> vector<16x128xf32>
    %c127_i32_203 = arith.constant 127 : i32
    %488 = tpu.dynamic_rotate %482 by %c127_i32_203 dim 1 : vector<16x128xf32>, i32 -> vector<16x128xf32>
    %c0_i32_204 = arith.constant 0 : i32
    %489 = vector.broadcast %c0_i32_204 : i32 to vector<16x128xi32>
    %490 = arith.cmpi eq, %1, %489 : vector<16x128xi32>
    %cst_205 = arith.constant 0.000000e+00 : f32
    %491 = vector.broadcast %cst_205 : f32 to vector<16x128xf32>
    %492 = arith.select %490, %491, %487 : vector<16x128xi1>, vector<16x128xf32>
    %c15_i32_206 = arith.constant 15 : i32
    %493 = vector.broadcast %c15_i32_206 : i32 to vector<16x128xi32>
    %494 = arith.cmpi eq, %1, %493 : vector<16x128xi32>
    %cst_207 = arith.constant 0.000000e+00 : f32
    %495 = vector.broadcast %cst_207 : f32 to vector<16x128xf32>
    %496 = arith.select %494, %495, %488 : vector<16x128xi1>, vector<16x128xf32>
    %c1_i32_208 = arith.constant 1 : i32
    %497 = tpu.dynamic_rotate %486 by %c1_i32_208 dim 0 : vector<16x128xf32>, i32 -> vector<16x128xf32>
    %c15_i32_209 = arith.constant 15 : i32
    %498 = tpu.dynamic_rotate %486 by %c15_i32_209 dim 0 : vector<16x128xf32>, i32 -> vector<16x128xf32>
    %c0_i32_210 = arith.constant 0 : i32
    %499 = vector.broadcast %c0_i32_210 : i32 to vector<16x128xi32>
    %500 = arith.cmpi eq, %0, %499 : vector<16x128xi32>
    %cst_211 = arith.constant 0.000000e+00 : f32
    %501 = vector.broadcast %cst_211 : f32 to vector<16x128xf32>
    %502 = arith.select %500, %501, %497 : vector<16x128xi1>, vector<16x128xf32>
    %c15_i32_212 = arith.constant 15 : i32
    %503 = vector.broadcast %c15_i32_212 : i32 to vector<16x128xi32>
    %504 = arith.cmpi eq, %0, %503 : vector<16x128xi32>
    %cst_213 = arith.constant 0.000000e+00 : f32
    %505 = vector.broadcast %cst_213 : f32 to vector<16x128xf32>
    %506 = arith.select %504, %505, %498 : vector<16x128xi1>, vector<16x128xf32>
    %507 = arith.subf %496, %492 : vector<16x128xf32>
    %cst_214 = arith.constant 5.000000e-01 : f32
    %508 = vector.broadcast %cst_214 : f32 to vector<16x128xf32>
    %509 = arith.mulf %507, %508 : vector<16x128xf32>
    %510 = arith.subf %506, %502 : vector<16x128xf32>
    %cst_215 = arith.constant 5.000000e-01 : f32
    %511 = vector.broadcast %cst_215 : f32 to vector<16x128xf32>
    %512 = arith.mulf %510, %511 : vector<16x128xf32>
    %513 = arith.addf %509, %512 : vector<16x128xf32>
    %cst_216 = arith.constant 0.000000e+00 : f32
    %514 = vector.broadcast %cst_216 : f32 to vector<16x128xf32>
    %515 = arith.subf %514, %513 : vector<16x128xf32>
    %cst_217 = arith.constant -2.500000e+01 : f32
    %516 = vector.broadcast %cst_217 : f32 to vector<16x128xf32>
    %517 = arith.mulf %515, %516 : vector<16x128xf32>
    %c0_218 = arith.constant 0 : index
    %c0_219 = arith.constant 0 : index
    %518 = vector.load %arg2[%c0_218, %c0_219] : memref<16x128xf32, #tpu.memory_space<vmem>>, vector<16x128xf32>
    %c0_i32_220 = arith.constant 0 : i32
    %c1_i32_221 = arith.constant 1 : i32
    %519 = tpu.dynamic_rotate %518 by %c1_i32_221 dim 1 : vector<16x128xf32>, i32 -> vector<16x128xf32>
    %c127_i32_222 = arith.constant 127 : i32
    %520 = tpu.dynamic_rotate %518 by %c127_i32_222 dim 1 : vector<16x128xf32>, i32 -> vector<16x128xf32>
    %c0_i32_223 = arith.constant 0 : i32
    %521 = vector.broadcast %c0_i32_223 : i32 to vector<16x128xi32>
    %522 = arith.cmpi eq, %1, %521 : vector<16x128xi32>
    %523 = arith.select %522, %518, %519 : vector<16x128xi1>, vector<16x128xf32>
    %c15_i32_224 = arith.constant 15 : i32
    %524 = vector.broadcast %c15_i32_224 : i32 to vector<16x128xi32>
    %525 = arith.cmpi eq, %1, %524 : vector<16x128xi32>
    %526 = arith.select %525, %518, %520 : vector<16x128xi1>, vector<16x128xf32>
    %c1_i32_225 = arith.constant 1 : i32
    %527 = tpu.dynamic_rotate %518 by %c1_i32_225 dim 0 : vector<16x128xf32>, i32 -> vector<16x128xf32>
    %c15_i32_226 = arith.constant 15 : i32
    %528 = tpu.dynamic_rotate %518 by %c15_i32_226 dim 0 : vector<16x128xf32>, i32 -> vector<16x128xf32>
    %c0_i32_227 = arith.constant 0 : i32
    %529 = vector.broadcast %c0_i32_227 : i32 to vector<16x128xi32>
    %530 = arith.cmpi eq, %0, %529 : vector<16x128xi32>
    %531 = arith.select %530, %518, %527 : vector<16x128xi1>, vector<16x128xf32>
    %c15_i32_228 = arith.constant 15 : i32
    %532 = vector.broadcast %c15_i32_228 : i32 to vector<16x128xi32>
    %533 = arith.cmpi eq, %0, %532 : vector<16x128xi32>
    %534 = arith.select %533, %518, %528 : vector<16x128xi1>, vector<16x128xf32>
    %535 = arith.addf %531, %534 : vector<16x128xf32>
    %536 = arith.addf %535, %523 : vector<16x128xf32>
    %537 = arith.addf %536, %526 : vector<16x128xf32>
    %cst_229 = arith.constant 4.000000e+00 : f32
    %538 = vector.broadcast %cst_229 : f32 to vector<16x128xf32>
    %539 = arith.mulf %538, %518 : vector<16x128xf32>
    %540 = arith.subf %537, %539 : vector<16x128xf32>
    %cst_230 = arith.constant -2.500000e-01 : f32
    %541 = vector.broadcast %cst_230 : f32 to vector<16x128xf32>
    %542 = arith.mulf %540, %541 : vector<16x128xf32>
    %543 = arith.subf %518, %542 : vector<16x128xf32>
    %544 = arith.addf %543, %517 : vector<16x128xf32>
    %c1_i32_231 = arith.constant 1 : i32
    %c1_i32_232 = arith.constant 1 : i32
    %545 = tpu.dynamic_rotate %544 by %c1_i32_232 dim 1 : vector<16x128xf32>, i32 -> vector<16x128xf32>
    %c127_i32_233 = arith.constant 127 : i32
    %546 = tpu.dynamic_rotate %544 by %c127_i32_233 dim 1 : vector<16x128xf32>, i32 -> vector<16x128xf32>
    %c0_i32_234 = arith.constant 0 : i32
    %547 = vector.broadcast %c0_i32_234 : i32 to vector<16x128xi32>
    %548 = arith.cmpi eq, %1, %547 : vector<16x128xi32>
    %549 = arith.select %548, %544, %545 : vector<16x128xi1>, vector<16x128xf32>
    %c15_i32_235 = arith.constant 15 : i32
    %550 = vector.broadcast %c15_i32_235 : i32 to vector<16x128xi32>
    %551 = arith.cmpi eq, %1, %550 : vector<16x128xi32>
    %552 = arith.select %551, %544, %546 : vector<16x128xi1>, vector<16x128xf32>
    %c1_i32_236 = arith.constant 1 : i32
    %553 = tpu.dynamic_rotate %544 by %c1_i32_236 dim 0 : vector<16x128xf32>, i32 -> vector<16x128xf32>
    %c15_i32_237 = arith.constant 15 : i32
    %554 = tpu.dynamic_rotate %544 by %c15_i32_237 dim 0 : vector<16x128xf32>, i32 -> vector<16x128xf32>
    %c0_i32_238 = arith.constant 0 : i32
    %555 = vector.broadcast %c0_i32_238 : i32 to vector<16x128xi32>
    %556 = arith.cmpi eq, %0, %555 : vector<16x128xi32>
    %557 = arith.select %556, %544, %553 : vector<16x128xi1>, vector<16x128xf32>
    %c15_i32_239 = arith.constant 15 : i32
    %558 = vector.broadcast %c15_i32_239 : i32 to vector<16x128xi32>
    %559 = arith.cmpi eq, %0, %558 : vector<16x128xi32>
    %560 = arith.select %559, %544, %554 : vector<16x128xi1>, vector<16x128xf32>
    %561 = arith.addf %557, %560 : vector<16x128xf32>
    %562 = arith.addf %561, %549 : vector<16x128xf32>
    %563 = arith.addf %562, %552 : vector<16x128xf32>
    %cst_240 = arith.constant 4.000000e+00 : f32
    %564 = vector.broadcast %cst_240 : f32 to vector<16x128xf32>
    %565 = arith.mulf %564, %544 : vector<16x128xf32>
    %566 = arith.subf %563, %565 : vector<16x128xf32>
    %cst_241 = arith.constant -2.500000e-01 : f32
    %567 = vector.broadcast %cst_241 : f32 to vector<16x128xf32>
    %568 = arith.mulf %566, %567 : vector<16x128xf32>
    %569 = arith.subf %544, %568 : vector<16x128xf32>
    %570 = arith.addf %569, %517 : vector<16x128xf32>
    %c2_i32 = arith.constant 2 : i32
    %c1_i32_242 = arith.constant 1 : i32
    %571 = tpu.dynamic_rotate %570 by %c1_i32_242 dim 1 : vector<16x128xf32>, i32 -> vector<16x128xf32>
    %c127_i32_243 = arith.constant 127 : i32
    %572 = tpu.dynamic_rotate %570 by %c127_i32_243 dim 1 : vector<16x128xf32>, i32 -> vector<16x128xf32>
    %c0_i32_244 = arith.constant 0 : i32
    %573 = vector.broadcast %c0_i32_244 : i32 to vector<16x128xi32>
    %574 = arith.cmpi eq, %1, %573 : vector<16x128xi32>
    %575 = arith.select %574, %570, %571 : vector<16x128xi1>, vector<16x128xf32>
    %c15_i32_245 = arith.constant 15 : i32
    %576 = vector.broadcast %c15_i32_245 : i32 to vector<16x128xi32>
    %577 = arith.cmpi eq, %1, %576 : vector<16x128xi32>
    %578 = arith.select %577, %570, %572 : vector<16x128xi1>, vector<16x128xf32>
    %c1_i32_246 = arith.constant 1 : i32
    %579 = tpu.dynamic_rotate %570 by %c1_i32_246 dim 0 : vector<16x128xf32>, i32 -> vector<16x128xf32>
    %c15_i32_247 = arith.constant 15 : i32
    %580 = tpu.dynamic_rotate %570 by %c15_i32_247 dim 0 : vector<16x128xf32>, i32 -> vector<16x128xf32>
    %c0_i32_248 = arith.constant 0 : i32
    %581 = vector.broadcast %c0_i32_248 : i32 to vector<16x128xi32>
    %582 = arith.cmpi eq, %0, %581 : vector<16x128xi32>
    %583 = arith.select %582, %570, %579 : vector<16x128xi1>, vector<16x128xf32>
    %c15_i32_249 = arith.constant 15 : i32
    %584 = vector.broadcast %c15_i32_249 : i32 to vector<16x128xi32>
    %585 = arith.cmpi eq, %0, %584 : vector<16x128xi32>
    %586 = arith.select %585, %570, %580 : vector<16x128xi1>, vector<16x128xf32>
    %587 = arith.addf %583, %586 : vector<16x128xf32>
    %588 = arith.addf %587, %575 : vector<16x128xf32>
    %589 = arith.addf %588, %578 : vector<16x128xf32>
    %cst_250 = arith.constant 4.000000e+00 : f32
    %590 = vector.broadcast %cst_250 : f32 to vector<16x128xf32>
    %591 = arith.mulf %590, %570 : vector<16x128xf32>
    %592 = arith.subf %589, %591 : vector<16x128xf32>
    %cst_251 = arith.constant -2.500000e-01 : f32
    %593 = vector.broadcast %cst_251 : f32 to vector<16x128xf32>
    %594 = arith.mulf %592, %593 : vector<16x128xf32>
    %595 = arith.subf %570, %594 : vector<16x128xf32>
    %596 = arith.addf %595, %517 : vector<16x128xf32>
    %c3_i32 = arith.constant 3 : i32
    %c1_i32_252 = arith.constant 1 : i32
    %597 = tpu.dynamic_rotate %596 by %c1_i32_252 dim 1 : vector<16x128xf32>, i32 -> vector<16x128xf32>
    %c127_i32_253 = arith.constant 127 : i32
    %598 = tpu.dynamic_rotate %596 by %c127_i32_253 dim 1 : vector<16x128xf32>, i32 -> vector<16x128xf32>
    %c0_i32_254 = arith.constant 0 : i32
    %599 = vector.broadcast %c0_i32_254 : i32 to vector<16x128xi32>
    %600 = arith.cmpi eq, %1, %599 : vector<16x128xi32>
    %601 = arith.select %600, %596, %597 : vector<16x128xi1>, vector<16x128xf32>
    %c15_i32_255 = arith.constant 15 : i32
    %602 = vector.broadcast %c15_i32_255 : i32 to vector<16x128xi32>
    %603 = arith.cmpi eq, %1, %602 : vector<16x128xi32>
    %604 = arith.select %603, %596, %598 : vector<16x128xi1>, vector<16x128xf32>
    %c1_i32_256 = arith.constant 1 : i32
    %605 = tpu.dynamic_rotate %596 by %c1_i32_256 dim 0 : vector<16x128xf32>, i32 -> vector<16x128xf32>
    %c15_i32_257 = arith.constant 15 : i32
    %606 = tpu.dynamic_rotate %596 by %c15_i32_257 dim 0 : vector<16x128xf32>, i32 -> vector<16x128xf32>
    %c0_i32_258 = arith.constant 0 : i32
    %607 = vector.broadcast %c0_i32_258 : i32 to vector<16x128xi32>
    %608 = arith.cmpi eq, %0, %607 : vector<16x128xi32>
    %609 = arith.select %608, %596, %605 : vector<16x128xi1>, vector<16x128xf32>
    %c15_i32_259 = arith.constant 15 : i32
    %610 = vector.broadcast %c15_i32_259 : i32 to vector<16x128xi32>
    %611 = arith.cmpi eq, %0, %610 : vector<16x128xi32>
    %612 = arith.select %611, %596, %606 : vector<16x128xi1>, vector<16x128xf32>
    %613 = arith.addf %609, %612 : vector<16x128xf32>
    %614 = arith.addf %613, %601 : vector<16x128xf32>
    %615 = arith.addf %614, %604 : vector<16x128xf32>
    %cst_260 = arith.constant 4.000000e+00 : f32
    %616 = vector.broadcast %cst_260 : f32 to vector<16x128xf32>
    %617 = arith.mulf %616, %596 : vector<16x128xf32>
    %618 = arith.subf %615, %617 : vector<16x128xf32>
    %cst_261 = arith.constant -2.500000e-01 : f32
    %619 = vector.broadcast %cst_261 : f32 to vector<16x128xf32>
    %620 = arith.mulf %618, %619 : vector<16x128xf32>
    %621 = arith.subf %596, %620 : vector<16x128xf32>
    %622 = arith.addf %621, %517 : vector<16x128xf32>
    %c4_i32 = arith.constant 4 : i32
    %c1_i32_262 = arith.constant 1 : i32
    %623 = tpu.dynamic_rotate %622 by %c1_i32_262 dim 1 : vector<16x128xf32>, i32 -> vector<16x128xf32>
    %c127_i32_263 = arith.constant 127 : i32
    %624 = tpu.dynamic_rotate %622 by %c127_i32_263 dim 1 : vector<16x128xf32>, i32 -> vector<16x128xf32>
    %c0_i32_264 = arith.constant 0 : i32
    %625 = vector.broadcast %c0_i32_264 : i32 to vector<16x128xi32>
    %626 = arith.cmpi eq, %1, %625 : vector<16x128xi32>
    %627 = arith.select %626, %622, %623 : vector<16x128xi1>, vector<16x128xf32>
    %c15_i32_265 = arith.constant 15 : i32
    %628 = vector.broadcast %c15_i32_265 : i32 to vector<16x128xi32>
    %629 = arith.cmpi eq, %1, %628 : vector<16x128xi32>
    %630 = arith.select %629, %622, %624 : vector<16x128xi1>, vector<16x128xf32>
    %c1_i32_266 = arith.constant 1 : i32
    %631 = tpu.dynamic_rotate %622 by %c1_i32_266 dim 0 : vector<16x128xf32>, i32 -> vector<16x128xf32>
    %c15_i32_267 = arith.constant 15 : i32
    %632 = tpu.dynamic_rotate %622 by %c15_i32_267 dim 0 : vector<16x128xf32>, i32 -> vector<16x128xf32>
    %c0_i32_268 = arith.constant 0 : i32
    %633 = vector.broadcast %c0_i32_268 : i32 to vector<16x128xi32>
    %634 = arith.cmpi eq, %0, %633 : vector<16x128xi32>
    %635 = arith.select %634, %622, %631 : vector<16x128xi1>, vector<16x128xf32>
    %c15_i32_269 = arith.constant 15 : i32
    %636 = vector.broadcast %c15_i32_269 : i32 to vector<16x128xi32>
    %637 = arith.cmpi eq, %0, %636 : vector<16x128xi32>
    %638 = arith.select %637, %622, %632 : vector<16x128xi1>, vector<16x128xf32>
    %639 = arith.addf %635, %638 : vector<16x128xf32>
    %640 = arith.addf %639, %627 : vector<16x128xf32>
    %641 = arith.addf %640, %630 : vector<16x128xf32>
    %cst_270 = arith.constant 4.000000e+00 : f32
    %642 = vector.broadcast %cst_270 : f32 to vector<16x128xf32>
    %643 = arith.mulf %642, %622 : vector<16x128xf32>
    %644 = arith.subf %641, %643 : vector<16x128xf32>
    %cst_271 = arith.constant -2.500000e-01 : f32
    %645 = vector.broadcast %cst_271 : f32 to vector<16x128xf32>
    %646 = arith.mulf %644, %645 : vector<16x128xf32>
    %647 = arith.subf %622, %646 : vector<16x128xf32>
    %648 = arith.addf %647, %517 : vector<16x128xf32>
    %c1_i32_272 = arith.constant 1 : i32
    %649 = tpu.dynamic_rotate %648 by %c1_i32_272 dim 1 : vector<16x128xf32>, i32 -> vector<16x128xf32>
    %c127_i32_273 = arith.constant 127 : i32
    %650 = tpu.dynamic_rotate %648 by %c127_i32_273 dim 1 : vector<16x128xf32>, i32 -> vector<16x128xf32>
    %c0_i32_274 = arith.constant 0 : i32
    %651 = vector.broadcast %c0_i32_274 : i32 to vector<16x128xi32>
    %652 = arith.cmpi eq, %1, %651 : vector<16x128xi32>
    %653 = arith.select %652, %648, %649 : vector<16x128xi1>, vector<16x128xf32>
    %c15_i32_275 = arith.constant 15 : i32
    %654 = vector.broadcast %c15_i32_275 : i32 to vector<16x128xi32>
    %655 = arith.cmpi eq, %1, %654 : vector<16x128xi32>
    %656 = arith.select %655, %648, %650 : vector<16x128xi1>, vector<16x128xf32>
    %c1_i32_276 = arith.constant 1 : i32
    %657 = tpu.dynamic_rotate %648 by %c1_i32_276 dim 0 : vector<16x128xf32>, i32 -> vector<16x128xf32>
    %c15_i32_277 = arith.constant 15 : i32
    %658 = tpu.dynamic_rotate %648 by %c15_i32_277 dim 0 : vector<16x128xf32>, i32 -> vector<16x128xf32>
    %c0_i32_278 = arith.constant 0 : i32
    %659 = vector.broadcast %c0_i32_278 : i32 to vector<16x128xi32>
    %660 = arith.cmpi eq, %0, %659 : vector<16x128xi32>
    %661 = arith.select %660, %648, %657 : vector<16x128xi1>, vector<16x128xf32>
    %c15_i32_279 = arith.constant 15 : i32
    %662 = vector.broadcast %c15_i32_279 : i32 to vector<16x128xi32>
    %663 = arith.cmpi eq, %0, %662 : vector<16x128xi32>
    %664 = arith.select %663, %648, %658 : vector<16x128xi1>, vector<16x128xf32>
    %665 = arith.subf %656, %653 : vector<16x128xf32>
    %cst_280 = arith.constant 5.000000e-03 : f32
    %666 = vector.broadcast %cst_280 : f32 to vector<16x128xf32>
    %667 = arith.mulf %665, %666 : vector<16x128xf32>
    %668 = arith.subf %482, %667 : vector<16x128xf32>
    %c0_281 = arith.constant 0 : index
    %c0_282 = arith.constant 0 : index
    %669 = vector.load %arg6[%c0_281, %c0_282] : memref<16x128xf32, #tpu.memory_space<vmem>>, vector<16x128xf32>
    tpu.vector_store %arg6[%c0_281, %c0_282], %668 {strides = array<i32>} : memref<16x128xf32, #tpu.memory_space<vmem>>, vector<16x128xf32>,
    %670 = arith.subf %664, %661 : vector<16x128xf32>
    %cst_283 = arith.constant 5.000000e-03 : f32
    %671 = vector.broadcast %cst_283 : f32 to vector<16x128xf32>
    %672 = arith.mulf %670, %671 : vector<16x128xf32>
    %673 = arith.subf %486, %672 : vector<16x128xf32>
    %c0_284 = arith.constant 0 : index
    %c0_285 = arith.constant 0 : index
    %674 = vector.load %arg7[%c0_284, %c0_285] : memref<16x128xf32, #tpu.memory_space<vmem>>, vector<16x128xf32>
    tpu.vector_store %arg7[%c0_284, %c0_285], %673 {strides = array<i32>} : memref<16x128xf32, #tpu.memory_space<vmem>>, vector<16x128xf32>,
    %c0_286 = arith.constant 0 : index
    %c0_287 = arith.constant 0 : index
    %675 = vector.load %arg8[%c0_286, %c0_287] : memref<16x128xf32, #tpu.memory_space<vmem>>, vector<16x128xf32>
    tpu.vector_store %arg8[%c0_286, %c0_287], %648 {strides = array<i32>} : memref<16x128xf32, #tpu.memory_space<vmem>>, vector<16x128xf32>,
    return
  }
}

</mosaic_0001>

<bundles_post_ra>
// kernel: ai4dem_fluids_forward.1
= control target key start
LH: loop header
LB: loop body
LE: loop exit
PB: predicated region body
PF: predicated region fallthrough
CT: control target
= control target key end

     0   :  { %s1001_s29 = smov 127   ;;  %s1002_s30 = smov 1   ;;  %v26_v4 = vlaneseq  ;;  %s1989_s0 = inlined_call_operand.vmem [shape: f32[16,128], index: 0, kind: input, shape index: {}, may-alias: {0,6}]   ;;  %s1990_s1 = inlined_call_operand.vmem [shape: f32[16,128], index: 1, kind: input, shape index: {}, may-alias: {1,7}]   ;;  %s1991_s3 = inlined_call_operand.vmem [shape: f32[16,128], index: 3, kind: input, shape index: {}]   ;;  %s1992_s2 = inlined_call_operand.vmem [shape: f32[16,128], index: 2, kind: input, shape index: {}, may-alias: {2,8}]   ;;  %s1993_s4 = inlined_call_operand.vmem [shape: f32[16,128], index: 4, kind: input, shape index: {}]   ;;  %s1994_s5 = inlined_call_operand.vmem [shape: f32[16,128], index: 5, kind: input, shape index: {}]   ;;  %s1995_s8 = inlined_call_operand.vmem [shape: f32[16,128], index: 8, kind: output, shape index: {2}, may-alias: {2,8}]   ;;  %s1996_s7 = inlined_call_operand.vmem [shape: f32[16,128], index: 7, kind: output, shape index: {1}, may-alias: {1,7}]   ;;  %s1997_s6 = inlined_call_operand.vmem [shape: f32[16,128], index: 6, kind: output, shape index: {0}, may-alias: {0,6}]  }
   0x1   :  { %v1051_v0 = vld [vmem:[%s1989_s0] sm:$0xff]  ;;  %v1060_v1 = vld [vmem:[%s1989_s0 + $0x8] sm:$0xff] }
   0x2   :  { %83 = vrot.lane.b32.xlu1 %v1051_v0, %s1001_s29  ;;  %79 = vrot.lane.b32.xlu0 %v1051_v0, %s1002_s30  ;;  %v1069_v2 = vld [vmem:[%s1990_s1] sm:$0xff]  ;;  %v1074_v3 = vld [vmem:[%s1990_s1 + $0x8] sm:$0xff]  ;;  %v1084_v5 = vshrl.u32 %v26_v4, 7  ;;  %v92_v6 = vrot.slane %v1060_v1, 7  ;;  %v91_v7 = vrot.slane %v1051_v0, 7  ;;  %v96_v8 = vrot.slane %v1060_v1, 1 }
   0x3   :  { %v95_v9 = vrot.slane %v1051_v0, 1  ;;  %v1098_v12 = vand.u32 127, %v26_v4  ;;  %v117_v17 = vrot.slane %v1069_v2, 7  ;;  %v118_v18 = vrot.slane %v1074_v3, 7 }
   0x4   :  { %vm49_vm0 = vcmp.lt.s32.totalorder %v1084_v5, 1  ;;  %vm54_vm1 = vcmp.lt.s32.totalorder %v1084_v5, 7  ;;  %vm57_vm2 = vcmp.eq.s32.totalorder %v1084_v5, 0  ;;  %v1096_v11 = vadd.s32 8, %v1084_v5 }
   0x5   :  { %v94_v10 = vsel %vm49_vm0, %v92_v6, %v91_v7  ;;  %v1102_v13 = vsel %vm54_vm1, %v95_v9, %v96_v8  ;;  %v98_v16 = vsel %vm54_vm1, %v96_v8, %v95_v9  ;;  %vm44_vm4 = vcmp.eq.s32.totalorder %v1098_v12, 15 }
   0x6   :  { %85 = vrot.lane.b32.xlu1 %v1060_v1, %s1001_s29  ;;  %81 = vrot.lane.b32.xlu0 %v1060_v1, %s1002_s30  ;;  %2008 = vst [vmem:[#allocation4_spill] sm:$0xff] %v1096_v11  ;;  %v1106_v14 = vsel %vm57_vm2, 0.0, %v94_v10  ;;  %vm62_vm3 = vcmp.eq.s32.totalorder %v1096_v11, 15  ;;  %vm41_vm5 = vcmp.eq.s32.totalorder %v1098_v12, 0  ;;  %v1123_v21 = vsel %vm49_vm0, %v91_v7, %v92_v6 }
   0x7   :  { %v133_v15 = vsub.f32 %v1102_v13, %v1106_v14  ;;  %v137_v20 = vadd.f32 %v1106_v14, %v1102_v13  ;;  %v1127_v22 = vsel %vm62_vm3, 0.0, %v98_v16  ;;  %v167_v24 = vand.u32 2147483647, %v1069_v2 }
   0x8   :  { %v134_v26 = vsub.f32 %v1127_v22, %v1123_v21  ;;  %v121_v27 = vrot.slane %v1069_v2, 1  ;;  %v122_v28 = vrot.slane %v1074_v3, 1  ;;  %v165_v31 = vand.u32 2147483647, %v1051_v0 }
   0x9   :  { %v1117_v19 = vmul.f32 0.5, %v133_v15  ;;  %v120_v32 = vsel %vm49_vm0, %v118_v18, %v117_v17  ;;  %v166_v34 = vand.u32 2147483647, %v1060_v1  ;;  %v138_v37 = vadd.f32 %v1127_v22, %v1123_v21 }
   0xa   :  { %105 = vrot.lane.b32.xlu0 %v1069_v2, %s1002_s30  ;;  %107 = vrot.lane.b32.xlu1 %v1074_v3, %s1002_s30  ;;  %v124_v38 = vsel %vm54_vm1, %v122_v28, %v121_v27  ;;  %v1156_v42 = vmul.f32 0.5, %v134_v26  ;;  %v1160_v43 = vsel %vm54_vm1, %v121_v27, %v122_v28  ;;  %v1164_v44 = vsel %vm57_vm2, 0.0, %v120_v32 }
   0xb   :  { %v175_v36 = vand.u32 2147483647, %v1117_v19  ;;  %2011 = vst [vmem:[#allocation7_spill] sm:$0xff] %v1164_v44  ;;  %v169_v45 = vadd.f32 %v167_v24, %v165_v31  ;;  %v168_v47 = vand.u32 2147483647, %v1074_v3  ;;  %v1180_v51 = vsel %vm49_vm0, %v117_v17, %v118_v18 }
   0xc   :  { %2013 = vst [vmem:[#allocation9_spill] sm:$0xff] %v1180_v51  ;;  %v1184_v52 = vsel %vm62_vm3, 0.0, %v124_v38  ;;  %v143_v54 = vmul.f32 4.0, %v1051_v0  ;;  %v151_v56 = vsub.f32 %v1160_v43, %v1164_v44  ;;  %v176_v59 = vand.u32 2147483647, %v1156_v42 }
   0xd   :  { %2014 = vst [vmem:[#allocation10_spill] sm:$0xff] %v1184_v52  ;;  %v155_v60 = vadd.f32 %v1164_v44, %v1160_v43  ;;  %v144_v63 = vmul.f32 4.0, %v1060_v1  ;;  %v170_v4 = vadd.f32 %v168_v47, %v166_v34  ;;  %v152_v6 = vsub.f32 %v1184_v52, %v1180_v51 }
   0xe   :  { %109 = vrot.lane.b32.xlu0 %v1069_v2, %s1001_s29  ;;  %111 = vrot.lane.b32.xlu1 %v1074_v3, %s1001_s29  ;;  %v171_v7 = vmul.f32 0.5, %v169_v45  ;;  %v156_v10 = vadd.f32 %v1184_v52, %v1180_v51  ;;  %v1207_v18 = vmul.f32 0.5, %v151_v56  ;;  %v161_v47 = vmul.f32 4.0, %v1069_v2 }
   0xf   :  { %v172_v28 = vmul.f32 0.5, %v170_v4  ;;  %v1218_v32 = vmul.f32 0.5, %v152_v6  ;;  %v162_v56 = vmul.f32 4.0, %v1074_v3 }
  0x74   :  { %v84_v23 = vpop.permute.xlu1 %83  ;;  %v80_v25 = vpop.permute.xlu0 %79 }
  0x75   :  { %v1136_v29 = vsel %vm44_vm4, 0.0, %v84_v23  ;;  %v1140_v30 = vsel %vm41_vm5, 0.0, %v80_v25 }
  0x76   :  { %2009 = vst [vmem:[#allocation5_spill] sm:$0xff] %v1136_v29  ;;  %2010 = vst [vmem:[#allocation6_spill] sm:$0xff] %v1140_v30  ;;  %v129_v33 = vsub.f32 %v1136_v29, %v1140_v30  ;;  %v139_v35 = vadd.f32 %v137_v20, %v1140_v30 }
  0x78   :  { %v1154_v39 = vmul.f32 0.5, %v129_v33  ;;  %v86_v40 = vpop.permute.xlu1 %85  ;;  %v82_v41 = vpop.permute.xlu0 %81  ;;  %v141_v53 = vadd.f32 %v139_v35, %v1136_v29 }
  0x79   :  { %v1168_v46 = vsel %vm44_vm4, 0.0, %v86_v40  ;;  %v1173_v48 = vsel %vm41_vm5, 0.0, %v82_v41  ;;  %v185_v40 = vand.u32 2147483647, %v1207_v18 }
  0x7a   :  { %2012 = vst [vmem:[#allocation8_spill] sm:$0xff] %v1173_v48  ;;  %v173_v49 = vand.u32 2147483647, %v1154_v39  ;;  %v130_v50 = vsub.f32 %v1168_v46, %v1173_v48  ;;  %v140_v55 = vadd.f32 %v138_v37, %v1173_v48  ;;  %v145_v15 = vsub.f32 %v141_v53, %v143_v54 }
  0x7b   :  { %v186_v53 = vand.u32 2147483647, %v1218_v32 }
  0x7c   :  { %v177_v57 = vadd.f32 %v175_v36, %v173_v49  ;;  %v1191_v58 = vmul.f32 0.5, %v130_v50  ;;  %v106_v61 = vpop.permute.xlu0 %105  ;;  %v108_v62 = vpop.permute.xlu1 %107  ;;  %v142_v16 = vadd.f32 %v140_v55, %v1168_v46  ;;  %v195_v37 = vmul.f32 %v171_v7, %v145_v15 }
  0x7d   :  { %v1205_v17 = vsel %vm41_vm5, 0.0, %v106_v61  ;;  %v1212_v25 = vsel %vm41_vm5, 0.0, %v108_v62 }
  0x7e   :  { %v179_v8 = vmul.f32 0.5, %v177_v57  ;;  %v174_v9 = vand.u32 2147483647, %v1191_v58  ;;  %v157_v24 = vadd.f32 %v155_v60, %v1205_v17  ;;  %v158_v35 = vadd.f32 %v156_v10, %v1212_v25 }
  0x7f   :  { %v146_v38 = vsub.f32 %v142_v16, %v144_v63 }
  0x80   :  { %v181_v20 = vadd.f32 0.001, %v179_v8  ;;  %v178_v23 = vadd.f32 %v176_v59, %v174_v9  ;;  %v110_v26 = vpop.permute.xlu0 %109  ;;  %v112_v27 = vpop.permute.xlu1 %111  ;;  %v197_v59 = vand.u32 2147483647, %v195_v37 }
  0x81   :  { %v1216_v31 = vsel %vm44_vm4, 0.0, %v110_v26  ;;  %v1222_v33 = vsel %vm44_vm4, 0.0, %v112_v27  ;;  %v196_v60 = vmul.f32 %v172_v28, %v146_v38 }
  0x82   :  { %979 = vrcp.f32 %v181_v20  ;;  %v180_v34 = vmul.f32 0.5, %v178_v23  ;;  %v147_v36 = vsub.f32 %v1216_v31, %v1205_v17  ;;  %v148_v41 = vsub.f32 %v1222_v33, %v1212_v25  ;;  %v1244_v23 = vld [vmem:[%s1991_s3] sm:$0xff] }
  0x83   :  { %v159_v50 = vadd.f32 %v157_v24, %v1216_v31  ;;  %v160_v57 = vadd.f32 %v158_v35, %v1222_v33  ;;  %v199_v9 = vmul.f32 0.25, %v197_v59  ;;  %v198_v10 = vand.u32 2147483647, %v196_v60  ;;  %v1273_v60 = vld [vmem:[%s1992_s2] sm:$0xff] }
  0x84   :  { %v182_v45 = vadd.f32 0.001, %v180_v34  ;;  %v1231_v49 = vmul.f32 0.5, %v147_v36  ;;  %v1235_v54 = vmul.f32 0.5, %v148_v41  ;;  %v1252_v41 = vld [vmem:[%s1991_s3 + $0x8] sm:$0xff] }
  0x85   :  { %v163_v62 = vsub.f32 %v159_v50, %v161_v47  ;;  %v164_v8 = vsub.f32 %v160_v57, %v162_v56  ;;  %v200_v37 = vmul.f32 0.25, %v198_v10 }
  0x86   :  { %981 = vrcp.f32 %v182_v45  ;;  %v183_v55 = vand.u32 2147483647, %v1231_v49  ;;  %v184_v61 = vand.u32 2147483647, %v1235_v54 }
  0x87   :  { %v207_v26 = vmul.f32 %v171_v7, %v163_v62  ;;  %v208_v35 = vmul.f32 %v172_v28, %v164_v8 }
  0x88   :  { %v187_v63 = vadd.f32 %v185_v40, %v183_v55  ;;  %v188_v4 = vadd.f32 %v186_v53, %v184_v61 }
  0x89   :  { %v209_v45 = vand.u32 2147483647, %v207_v26  ;;  %v210_v7 = vand.u32 2147483647, %v208_v35 }
  0x8a   :  { %v189_v6 = vmul.f32 0.5, %v187_v63  ;;  %v190_v16 = vmul.f32 0.5, %v188_v4 }
  0x8b   :  { %v211_v53 = vmul.f32 0.25, %v209_v45 }
  0x8c   :  { %v980_v20 = vpop.eup %979  ;;  %v191_v24 = vadd.f32 0.001, %v189_v6  ;;  %v192_v34 = vadd.f32 0.001, %v190_v16 }
  0x8d   :  { %v203_v27 = vmul.f32 %v980_v20, %v199_v9 }
  0x8e   :  { %983 = vrcp.f32 %v191_v24 }
  0x8f   :  { %v1247_v36 = vmin.f32 %v203_v27, %v1244_v23  ;;  %985 = vrcp.f32 %v192_v34 }
  0x90   :  { %v982_v40 = vpop.eup %981 }
  0x91   :  { %v204_v47 = vmul.f32 %v982_v40, %v200_v37  ;;  %219 = vrot.lane.b32.xlu0 %v1247_v36, %s1002_s30  ;;  %v1257_v50 = vmul.f32 %v1247_v36, %v145_v15  ;;  %v231_v55 = vrot.slane %v1247_v36, 7  ;;  %v235_v57 = vrot.slane %v1247_v36, 1  ;;  %v1300_v40 = vld [vmem:[%s1992_s2 + $0x8] sm:$0xff] }
  0x92   :  { %v212_v15 = vmul.f32 0.25, %v210_v7 }
  0x93   :  { %v1260_v28 = vmin.f32 %v204_v47, %v1252_v41 }
  0x95   :  { %223 = vrot.lane.b32.xlu0 %v1247_v36, %s1001_s29  ;;  %221 = vrot.lane.b32.xlu1 %v1260_v28, %s1002_s30  ;;  %v232_v56 = vrot.slane %v1260_v28, 7  ;;  %v236_v59 = vrot.slane %v1260_v28, 1  ;;  %v1276_v61 = vmul.f32 %v1260_v28, %v146_v38 }
  0x97   :  { %v234_v63 = vsel %vm49_vm0, %v232_v56, %v231_v55  ;;  %v237_v4 = vsel %vm54_vm1, %v235_v57, %v236_v59  ;;  %v233_v6 = vsel %vm49_vm0, %v231_v55, %v232_v56  ;;  %v238_v9 = vsel %vm54_vm1, %v236_v59, %v235_v57 }
  0x98   :  { %v984_v10 = vpop.eup %983  ;;  %v239_v16 = vsel %vm57_vm2, 0.0, %v234_v63  ;;  %v289_v20 = vmul.f32 %v237_v4, %v1102_v13  ;;  %v242_v38 = vsel %vm62_vm3, 0.0, %v238_v9  ;;  %v288_v24 = vmul.f32 %v233_v6, %v1123_v21 }
  0x99   :  { %v986_v26 = vpop.eup %985  ;;  %v215_v27 = vmul.f32 %v984_v10, %v211_v53  ;;  %33 = vrot.lane.b32.xlu0 %v1273_v60, %s1002_s30  ;;  %225 = vrot.lane.b32.xlu1 %v1260_v28, %s1001_s29  ;;  %v267_v34 = vadd.f32 %v239_v16, %v237_v4  ;;  %v287_v35 = vmul.f32 %v239_v16, %v1106_v14 }
  0x9a   :  { %v216_v37 = vmul.f32 %v986_v26, %v212_v15  ;;  %v268_v45 = vadd.f32 %v242_v38, %v233_v6  ;;  %v290_v47 = vmul.f32 %v242_v38, %v1127_v22 }
  0x9b   :  { %v1304_v7 = vmin.f32 %v215_v27, %v1244_v23  ;;  %v291_v53 = vadd.f32 %v289_v20, %v287_v35 }
  0x9c   :  { %v1307_v55 = vmin.f32 %v216_v37, %v1252_v41  ;;  %v292_v56 = vadd.f32 %v290_v47, %v288_v24 }
  0x9d   :  { %v1310_v57 = vmul.f32 %v1304_v7, %v163_v62  ;;  %37 = vrot.lane.b32.xlu0 %v1273_v60, %s1001_s29  ;;  %35 = vrot.lane.b32.xlu1 %v1300_v40, %s1002_s30  ;;  %v255_v59 = vrot.slane %v1304_v7, 7  ;;  %v259_v15 = vrot.slane %v1304_v7, 1 }
  0x9e   :  { %v1319_v63 = vmul.f32 %v1307_v55, %v164_v8  ;;  %v256_v4 = vrot.slane %v1307_v55, 7  ;;  %v260_v6 = vrot.slane %v1307_v55, 1 }
  0xa0   :  { %v258_v62 = vsel %vm49_vm0, %v256_v4, %v255_v59  ;;  %v261_v9 = vsel %vm54_vm1, %v259_v15, %v260_v6  ;;  %v257_v10 = vsel %vm49_vm0, %v255_v59, %v256_v4  ;;  %v262_v24 = vsel %vm54_vm1, %v260_v6, %v259_v15 }
  0xa1   :  { %243 = vrot.lane.b32.xlu0 %v1304_v7, %s1002_s30  ;;  %39 = vrot.lane.b32.xlu1 %v1300_v40, %s1001_s29  ;;  %v263_v8 = vsel %vm57_vm2, 0.0, %v258_v62  ;;  %v309_v16 = vmul.f32 %v261_v9, %v1160_v43  ;;  %v308_v26 = vmul.f32 %v257_v10, %v1180_v51  ;;  %v266_v35 = vsel %vm62_vm3, 0.0, %v262_v24 }
  0xa2   :  { %v1336_v20 = vadd.f32 %v263_v8, %v261_v9  ;;  %v307_v38 = vmul.f32 %v263_v8, %v1164_v44  ;;  %v1350_v37 = vadd.f32 %v266_v35, %v257_v10  ;;  %v310_v47 = vmul.f32 %v266_v35, %v1184_v52 }
  0xa3   :  { %v301_v8 = vmul.f32 %v1247_v36, %v1051_v0 }
  0xa4   :  { %v1342_v27 = vadd.f32 %v309_v16, %v307_v38  ;;  %v1353_v59 = vadd.f32 %v310_v47, %v308_v26  ;;  %v273_v38 = vmul.f32 4.0, %v1247_v36 }
  0xa5   :  { %247 = vrot.lane.b32.xlu0 %v1304_v7, %s1001_s29  ;;  %245 = vrot.lane.b32.xlu1 %v1307_v55, %s1002_s30  ;;  %v303_v52 = vmul.f32 4.0, %v301_v8 }
  0xa9   :  { %249 = vrot.lane.b32.xlu1 %v1307_v55, %s1001_s29 }
 0x103   :  { %v220_v15 = vpop.permute.xlu0 %219 }
 0x104   :  { %v227_v4 = vsel %vm41_vm5, 0.0, %v220_v15 }
 0x105   :  { %v293_v6 = vmul.f32 %v227_v4, %v1140_v30  ;;  %v269_v62 = vadd.f32 %v267_v34, %v227_v4  ;;  %v302_v34 = vmul.f32 %v1260_v28, %v1060_v1 }
 0x107   :  { %v224_v9 = vpop.permute.xlu0 %223  ;;  %v222_v10 = vpop.permute.xlu1 %221  ;;  %v295_v26 = vadd.f32 %v293_v6, %v291_v53 }
 0x108   :  { %v229_v16 = vsel %vm44_vm4, 0.0, %v224_v9  ;;  %v228_v24 = vsel %vm41_vm5, 0.0, %v222_v10  ;;  %v274_v10 = vmul.f32 4.0, %v1260_v28 }
 0x109   :  { %v271_v35 = vadd.f32 %v269_v62, %v229_v16  ;;  %v297_v47 = vmul.f32 %v229_v16, %v1136_v29  ;;  %v294_v15 = vmul.f32 %v228_v24, %v1173_v48  ;;  %v270_v44 = vadd.f32 %v268_v45, %v228_v24 }
 0x10a   :  { %v304_v48 = vmul.f32 4.0, %v302_v34  ;;  %v348_v34 = vmul.f32 %v1191_v58, %v1060_v1  ;;  %v284_v58 = vmul.f32 4.0, %v1307_v55 }
 0x10b   :  { %v275_v4 = vsub.f32 %v271_v35, %v273_v38  ;;  %v299_v30 = vadd.f32 %v297_v47, %v295_v26  ;;  %v34_v51 = vpop.permute.xlu0 %33  ;;  %v226_v9 = vpop.permute.xlu1 %225  ;;  %v296_v6 = vadd.f32 %v294_v15, %v292_v56  ;;  %v351_v15 = vmul.f32 %v1117_v19, %v1069_v2 }
 0x10c   :  { %v230_v36 = vsel %vm44_vm4, 0.0, %v226_v9  ;;  %v42_v47 = vsel %vm41_vm5, %v1273_v60, %v34_v51 }
 0x10d   :  { %v305_v53 = vsub.f32 %v299_v30, %v303_v52  ;;  %v272_v62 = vadd.f32 %v270_v44, %v230_v36  ;;  %v298_v16 = vmul.f32 %v230_v36, %v1168_v46  ;;  %v331_v38 = vmul.f32 %v275_v4, %v1051_v0 }
 0x10e   :  { %v347_v44 = vmul.f32 %v1154_v39, %v1051_v0  ;;  %v321_v52 = vmul.f32 %v1304_v7, %v1069_v2 }
 0x10f   :  { %v329_v29 = vadd.f32 %v1257_v50, %v305_v53  ;;  %v276_v26 = vsub.f32 %v272_v62, %v274_v10  ;;  %v300_v8 = vadd.f32 %v298_v16, %v296_v6  ;;  %v38_v45 = vpop.permute.xlu0 %37  ;;  %v36_v24 = vpop.permute.xlu1 %35  ;;  %v283_v53 = vmul.f32 4.0, %v1304_v7 }
 0x110   :  { %v45_v30 = vsel %vm44_vm4, %v1273_v60, %v38_v45  ;;  %v43_v19 = vsel %vm41_vm5, %v1300_v40, %v36_v24  ;;  %v323_v6 = vmul.f32 4.0, %v321_v52  ;;  %v47_v52 = vrot.slane %v1273_v60, 7 }
 0x111   :  { %v333_v35 = vsub.f32 %v329_v29, %v331_v38  ;;  %v306_v28 = vsub.f32 %v300_v8, %v304_v48  ;;  %v332_v29 = vmul.f32 %v276_v26, %v1060_v1  ;;  %v65_v4 = vsub.f32 %v45_v30, %v42_v47 }
 0x113   :  { %v335_v50 = vmul.f32 1.5, %v333_v35  ;;  %v330_v56 = vadd.f32 %v1276_v61, %v306_v28  ;;  %v244_v51 = vpop.permute.xlu0 %243  ;;  %v40_v48 = vpop.permute.xlu1 %39  ;;  %v352_v61 = vmul.f32 %v1156_v42, %v1074_v3  ;;  %v1407_v42 = vmul.f32 0.005, %v65_v4 }
 0x114   :  { %v251_v39 = vsel %vm41_vm5, 0.0, %v244_v51  ;;  %v46_v26 = vsel %vm44_vm4, %v1300_v40, %v40_v48  ;;  %v52_v4 = vrot.slane %v1273_v60, 1 }
 0x115   :  { %v349_v9 = vsub.f32 %v335_v50, %v347_v44  ;;  %v334_v36 = vsub.f32 %v330_v56, %v332_v29  ;;  %v313_v10 = vmul.f32 %v251_v39, %v1205_v17  ;;  %v279_v38 = vadd.f32 %v1336_v20, %v251_v39 }
 0x116   :  { %v66_v44 = vsub.f32 %v46_v26, %v43_v19  ;;  %v48_v50 = vrot.slane %v1300_v40, 7  ;;  %v322_v39 = vmul.f32 %v1307_v55, %v1074_v3  ;;  %v53_v19 = vrot.slane %v1300_v40, 1 }
 0x117   :  { %v336_v62 = vmul.f32 1.5, %v334_v36  ;;  %v353_v16 = vsub.f32 %v349_v9, %v351_v15  ;;  %v248_v8 = vpop.permute.xlu0 %247  ;;  %v246_v45 = vpop.permute.xlu1 %245  ;;  %v315_v35 = vadd.f32 %v313_v10, %v1342_v27 }
 0x118   :  { %v253_v7 = vsel %vm44_vm4, 0.0, %v248_v8  ;;  %v252_v24 = vsel %vm41_vm5, 0.0, %v246_v45 }
 0x119   :  { %v350_v47 = vsub.f32 %v336_v62, %v348_v34  ;;  %v355_v28 = vmul.f32 0.005, %v353_v16  ;;  %v281_v30 = vadd.f32 %v279_v38, %v253_v7  ;;  %v317_v20 = vmul.f32 %v253_v7, %v1216_v31 }
 0x11a   :  { %v314_v56 = vmul.f32 %v252_v24, %v1212_v25  ;;  %v280_v34 = vadd.f32 %v1350_v37, %v252_v24  ;;  %v1433_v38 = vmul.f32 0.005, %v66_v44  ;;  %v1445_v24 = vsel %vm54_vm1, %v52_v4, %v53_v19 }
 0x11b   :  { %v357_v27 = vadd.f32 %v355_v28, %v1051_v0  ;;  %v354_v29 = vsub.f32 %v350_v47, %v352_v61  ;;  %v285_v15 = vsub.f32 %v281_v30, %v283_v53  ;;  %v319_v51 = vadd.f32 %v317_v20, %v315_v35  ;;  %v250_v48 = vpop.permute.xlu1 %249 }
 0x11c   :  { %v254_v9 = vsel %vm44_vm4, 0.0, %v250_v48  ;;  %v51_v53 = vsel %vm49_vm0, %v48_v50, %v47_v52  ;;  %v316_v62 = vadd.f32 %v314_v56, %v1353_v59  ;;  %v363_v28 = vmul.f32 %v1231_v49, %v1051_v0 }
 0x11d   :  { %v1426_v36 = vsub.f32 %v357_v27, %v1407_v42  ;;  %v356_v10 = vmul.f32 0.005, %v354_v29  ;;  %v325_v61 = vsub.f32 %v319_v51, %v323_v6  ;;  %v282_v16 = vadd.f32 %v280_v34, %v254_v9 }
 0x11e   :  { %v318_v37 = vmul.f32 %v254_v9, %v1222_v33  ;;  %v341_v8 = vmul.f32 %v285_v15, %v1069_v2  ;;  %v324_v6 = vmul.f32 4.0, %v322_v39  ;;  %v56_v20 = vsel %vm54_vm1, %v53_v19, %v52_v4 }
 0x11f   :  { %v358_v55 = vadd.f32 %v356_v10, %v1060_v1  ;;  %v339_v26 = vadd.f32 %v1310_v57, %v325_v61  ;;  %379 = vrot.lane.b32.xlu0 %v1426_v36, %s1002_s30  ;;  %v286_v45 = vsub.f32 %v282_v16, %v284_v58  ;;  %v1450_v57 = vsel %vm57_vm2, %v1273_v60, %v51_v53 }
 0x120   :  { %v320_v35 = vadd.f32 %v318_v37, %v316_v62  ;;  %v367_v58 = vmul.f32 %v1207_v18, %v1069_v2  ;;  %v71_v0 = vsub.f32 %v1445_v24, %v1450_v57  ;;  %v1468_v29 = vsel %vm49_vm0, %v47_v52, %v48_v50 }
 0x121   :  { %v1441_v7 = vsub.f32 %v358_v55, %v1433_v38  ;;  %v343_v59 = vsub.f32 %v339_v26, %v341_v8  ;;  %v342_v56 = vmul.f32 %v286_v45, %v1074_v3  ;;  %2015 = vst [vmem:[#allocation11_spill] sm:$0xff] %v1468_v29  ;;  %v1473_v15 = vsel %vm62_vm3, %v1300_v40, %v56_v20 }
 0x122   :  { %v326_v47 = vsub.f32 %v320_v35, %v324_v6  ;;  %2016 = vst [vmem:[#allocation12_spill] sm:$0xff] %v1473_v15  ;;  %v368_v51 = vmul.f32 %v1218_v32, %v1074_v3  ;;  %v1481_v4 = vmul.f32 0.005, %v71_v0  ;;  %v72_v52 = vsub.f32 %v1473_v15, %v1468_v29 }
 0x123   :  { %v345_v30 = vmul.f32 1.5, %v343_v59  ;;  %383 = vrot.lane.b32.xlu0 %v1426_v36, %s1001_s29  ;;  %381 = vrot.lane.b32.xlu1 %v1441_v7, %s1002_s30  ;;  %v391_v61 = vrot.slane %v1426_v36, 7  ;;  %v396_v53 = vrot.slane %v1441_v7, 1  ;;  %v395_v62 = vrot.slane %v1426_v36, 1 }
 0x124   :  { %v340_v44 = vadd.f32 %v1319_v63, %v326_v47  ;;  %v364_v63 = vmul.f32 %v1235_v54, %v1060_v1  ;;  %v1489_v19 = vmul.f32 0.005, %v72_v52  ;;  %v441_v0 = vmul.f32 4.0, %v1426_v36 }
 0x125   :  { %v365_v49 = vsub.f32 %v345_v30, %v363_v28  ;;  %v398_v16 = vsel %vm54_vm1, %v396_v53, %v395_v62  ;;  %v397_v37 = vsel %vm54_vm1, %v395_v62, %v396_v53  ;;  %v464_v62 = vand.u32 2147483647, %v1441_v7 }
 0x126   :  { %v344_v27 = vsub.f32 %v340_v44, %v342_v56  ;;  %v402_v6 = vsel %vm62_vm3, 0.0, %v398_v16 }
 0x127   :  { %v369_v18 = vsub.f32 %v365_v49, %v367_v58  ;;  %385 = vrot.lane.b32.xlu1 %v1441_v7, %s1001_s29 }
 0x128   :  { %v346_v48 = vmul.f32 1.5, %v344_v27 }
 0x129   :  { %v371_v34 = vmul.f32 0.005, %v369_v18 }
 0x12a   :  { %v366_v50 = vsub.f32 %v346_v48, %v364_v63 }
 0x12b   :  { %v373_v39 = vadd.f32 %v371_v34, %v1069_v2  ;;  %v392_v2 = vrot.slane %v1441_v7, 7 }
 0x12c   :  { %v370_v9 = vsub.f32 %v366_v50, %v368_v51 }
 0x12d   :  { %v1487_v10 = vsub.f32 %v373_v39, %v1481_v4  ;;  %v393_v8 = vsel %vm49_vm0, %v391_v61, %v392_v2 }
 0x12e   :  { %v372_v1 = vmul.f32 0.005, %v370_v9  ;;  %v432_v47 = vsub.f32 %v402_v6, %v393_v8 }
 0x12f   :  { %403 = vrot.lane.b32.xlu0 %v1487_v10, %s1002_s30  ;;  %v465_v51 = vand.u32 2147483647, %v1487_v10  ;;  %v415_v9 = vrot.slane %v1487_v10, 7 }
 0x130   :  { %v374_v32 = vadd.f32 %v372_v1, %v1074_v3  ;;  %v394_v3 = vsel %vm49_vm0, %v392_v2, %v391_v61  ;;  %v1528_v49 = vmul.f32 0.5, %v432_v47  ;;  %v436_v2 = vadd.f32 %v402_v6, %v393_v8 }
 0x131   :  { %v399_v55 = vsel %vm57_vm2, 0.0, %v394_v3 }
 0x132   :  { %v1495_v54 = vsub.f32 %v374_v32, %v1489_v19  ;;  %v431_v45 = vsub.f32 %v397_v37, %v399_v55  ;;  %v435_v44 = vadd.f32 %v399_v55, %v397_v37  ;;  %v463_v32 = vand.u32 2147483647, %v1426_v36 }
 0x133   :  { %407 = vrot.lane.b32.xlu0 %v1487_v10, %s1001_s29  ;;  %v474_v8 = vand.u32 2147483647, %v1528_v49 }
 0x134   :  { %405 = vrot.lane.b32.xlu1 %v1495_v54, %s1002_s30  ;;  %v1523_v30 = vmul.f32 0.5, %v431_v45  ;;  %v416_v18 = vrot.slane %v1495_v54, 7  ;;  %v420_v61 = vrot.slane %v1495_v54, 1  ;;  %v467_v37 = vadd.f32 %v465_v51, %v463_v32 }
 0x135   :  { %v419_v45 = vrot.slane %v1487_v10, 1  ;;  %v442_v51 = vmul.f32 4.0, %v1441_v7  ;;  %v460_v15 = vmul.f32 4.0, %v1495_v54 }
 0x136   :  { %v473_v50 = vand.u32 2147483647, %v1523_v30  ;;  %v418_v16 = vsel %vm49_vm0, %v416_v18, %v415_v9 }
 0x138   :  { %409 = vrot.lane.b32.xlu1 %v1495_v54, %s1001_s29 }
 0x191   :  { %v380_v26 = vpop.permute.xlu0 %379 }
 0x192   :  { %v387_v28 = vsel %vm41_vm5, 0.0, %v380_v26  ;;  %v466_v26 = vand.u32 2147483647, %v1495_v54 }
 0x193   :  { %v437_v63 = vadd.f32 %v435_v44, %v387_v28 }
 0x195   :  { %v384_v35 = vpop.permute.xlu0 %383  ;;  %v382_v59 = vpop.permute.xlu1 %381 }
 0x196   :  { %v389_v58 = vsel %vm44_vm4, 0.0, %v384_v35  ;;  %v388_v48 = vsel %vm41_vm5, 0.0, %v382_v59 }
 0x197   :  { %v427_v20 = vsub.f32 %v389_v58, %v387_v28  ;;  %v439_v1 = vadd.f32 %v437_v63, %v389_v58  ;;  %v438_v55 = vadd.f32 %v436_v2, %v388_v48  ;;  %v421_v28 = vsel %vm54_vm1, %v419_v45, %v420_v61 }
 0x198   :  { %v423_v58 = vsel %vm57_vm2, 0.0, %v418_v16  ;;  %v469_v63 = vmul.f32 0.5, %v467_v37  ;;  %v417_v2 = vsel %vm49_vm0, %v415_v9, %v416_v18 }
 0x199   :  { %v1525_v56 = vmul.f32 0.5, %v427_v20  ;;  %v386_v27 = vpop.permute.xlu1 %385  ;;  %v443_v6 = vsub.f32 %v439_v1, %v441_v0  ;;  %v449_v0 = vsub.f32 %v421_v28, %v423_v58 }
 0x19a   :  { %v390_v34 = vsel %vm44_vm4, 0.0, %v386_v27 }
 0x19b   :  { %v471_v52 = vand.u32 2147483647, %v1525_v56  ;;  %v428_v39 = vsub.f32 %v390_v34, %v388_v48  ;;  %v440_v47 = vadd.f32 %v438_v55, %v390_v34  ;;  %v468_v48 = vadd.f32 %v466_v26, %v464_v62 }
 0x19c   :  { %v491_v34 = vmul.f32 %v469_v63, %v443_v6  ;;  %v1565_v55 = vmul.f32 0.5, %v449_v0  ;;  %v453_v26 = vadd.f32 %v423_v58, %v421_v28 }
 0x19d   :  { %v475_v53 = vadd.f32 %v473_v50, %v471_v52  ;;  %v1541_v3 = vmul.f32 0.5, %v428_v39  ;;  %v422_v52 = vsel %vm54_vm1, %v420_v61, %v419_v45  ;;  %v444_v39 = vsub.f32 %v440_v47, %v442_v51 }
 0x19e   :  { %v470_v16 = vmul.f32 0.5, %v468_v48 }
 0x19f   :  { %v477_v35 = vmul.f32 0.5, %v475_v53  ;;  %v472_v59 = vand.u32 2147483647, %v1541_v3  ;;  %v426_v53 = vsel %vm62_vm3, 0.0, %v422_v52 }
 0x1a0   :  { %v454_v47 = vadd.f32 %v426_v53, %v417_v2 }
 0x1a1   :  { %v479_v20 = vadd.f32 0.001, %v477_v35  ;;  %v476_v44 = vadd.f32 %v474_v8, %v472_v59  ;;  %v404_v27 = vpop.permute.xlu0 %403  ;;  %v493_v35 = vand.u32 2147483647, %v491_v34  ;;  %v492_v59 = vmul.f32 %v470_v16, %v444_v39 }
 0x1a2   :  { %v411_v62 = vsel %vm41_vm5, 0.0, %v404_v27  ;;  %v450_v8 = vsub.f32 %v426_v53, %v417_v2  ;;  %v483_v27 = vand.u32 2147483647, %v1565_v55 }
 0x1a3   :  { %987 = vrcp.f32 %v479_v20  ;;  %v478_v50 = vmul.f32 0.5, %v476_v44  ;;  %v455_v18 = vadd.f32 %v453_v26, %v411_v62  ;;  %v495_v58 = vmul.f32 0.25, %v493_v35 }
 0x1a4   :  { %v494_v52 = vand.u32 2147483647, %v492_v59 }
 0x1a5   :  { %v480_v1 = vadd.f32 0.001, %v478_v50  ;;  %v408_v32 = vpop.permute.xlu0 %407  ;;  %v1575_v50 = vmul.f32 0.5, %v450_v8 }
 0x1a6   :  { %v413_v61 = vsel %vm44_vm4, 0.0, %v408_v32  ;;  %v406_v37 = vpop.permute.xlu1 %405 }
 0x1a7   :  { %989 = vrcp.f32 %v480_v1  ;;  %v445_v45 = vsub.f32 %v413_v61, %v411_v62  ;;  %v412_v20 = vsel %vm41_vm5, 0.0, %v406_v37  ;;  %v457_v51 = vadd.f32 %v455_v18, %v413_v61 }
 0x1a8   :  { %v459_v1 = vmul.f32 4.0, %v1487_v10  ;;  %v456_v2 = vadd.f32 %v454_v47, %v412_v20  ;;  %v496_v18 = vmul.f32 0.25, %v494_v52  ;;  %v484_v35 = vand.u32 2147483647, %v1575_v50 }
 0x1a9   :  { %v1567_v9 = vmul.f32 0.5, %v445_v45 }
 0x1aa   :  { %v410_v44 = vpop.permute.xlu1 %409  ;;  %v461_v37 = vsub.f32 %v457_v51, %v459_v1 }
 0x1ab   :  { %v481_v48 = vand.u32 2147483647, %v1567_v9  ;;  %v414_v28 = vsel %vm44_vm4, 0.0, %v410_v44 }
 0x1ac   :  { %v446_v0 = vsub.f32 %v414_v28, %v412_v20  ;;  %v458_v26 = vadd.f32 %v456_v2, %v414_v28  ;;  %v503_v51 = vmul.f32 %v469_v63, %v461_v37 }
 0x1ad   :  { %v988_v34 = vpop.eup %987  ;;  %v485_v32 = vadd.f32 %v483_v27, %v481_v48 }
 0x1ae   :  { %v499_v53 = vmul.f32 %v988_v34, %v495_v58  ;;  %v1578_v62 = vmul.f32 0.5, %v446_v0  ;;  %v462_v48 = vsub.f32 %v458_v26, %v460_v15  ;;  %v505_v1 = vand.u32 2147483647, %v503_v51 }
 0x1af   :  { %v487_v61 = vmul.f32 0.5, %v485_v32 }
 0x1b0   :  { %v1581_v45 = vmin.f32 %v499_v53, %v1244_v23  ;;  %v482_v59 = vand.u32 2147483647, %v1578_v62  ;;  %v504_v32 = vmul.f32 %v470_v16, %v462_v48 }
 0x1b1   :  { %v990_v8 = vpop.eup %989  ;;  %v489_v44 = vadd.f32 0.001, %v487_v61 }
 0x1b2   :  { %v1587_v47 = vmul.f32 %v1581_v45, %v443_v6  ;;  %v500_v20 = vmul.f32 %v990_v8, %v496_v18  ;;  %v486_v27 = vadd.f32 %v484_v35, %v482_v59  ;;  %515 = vrot.lane.b32.xlu0 %v1581_v45, %s1002_s30  ;;  %v527_v52 = vrot.slane %v1581_v45, 7 }
 0x1b3   :  { %991 = vrcp.f32 %v489_v44  ;;  %v531_v0 = vrot.slane %v1581_v45, 1 }
 0x1b4   :  { %v1592_v28 = vmin.f32 %v500_v20, %v1252_v41  ;;  %v488_v58 = vmul.f32 0.5, %v486_v27  ;;  %v507_v27 = vmul.f32 0.25, %v505_v1 }
 0x1b6   :  { %v1597_v34 = vmul.f32 %v1592_v28, %v444_v39  ;;  %v490_v6 = vadd.f32 0.001, %v488_v58  ;;  %519 = vrot.lane.b32.xlu0 %v1581_v45, %s1001_s29  ;;  %517 = vrot.lane.b32.xlu1 %v1592_v28, %s1002_s30  ;;  %v528_v15 = vrot.slane %v1592_v28, 7  ;;  %v532_v63 = vrot.slane %v1592_v28, 1 }
 0x1b7   :  { %v506_v58 = vand.u32 2147483647, %v504_v32 }
 0x1b8   :  { %993 = vrcp.f32 %v490_v6  ;;  %v530_v2 = vsel %vm49_vm0, %v528_v15, %v527_v52  ;;  %v533_v39 = vsel %vm54_vm1, %v531_v0, %v532_v63  ;;  %v529_v53 = vsel %vm49_vm0, %v527_v52, %v528_v15 }
 0x1b9   :  { %v535_v61 = vsel %vm57_vm2, 0.0, %v530_v2  ;;  %v585_v26 = vmul.f32 %v533_v39, %v1102_v13  ;;  %v534_v18 = vsel %vm54_vm1, %v532_v63, %v531_v0  ;;  %v584_v16 = vmul.f32 %v529_v53, %v1123_v21 }
 0x1ba   :  { %521 = vrot.lane.b32.xlu1 %v1592_v28, %s1001_s29  ;;  %v563_v35 = vadd.f32 %v535_v61, %v533_v39  ;;  %v583_v59 = vmul.f32 %v535_v61, %v1106_v14  ;;  %v538_v8 = vsel %vm62_vm3, 0.0, %v534_v18  ;;  %v508_v6 = vmul.f32 0.25, %v506_v58  ;;  %v2019_v58 = vld [vmem:[#allocation10_spill] sm:$0xff] }
 0x1bb   :  { %v564_v44 = vadd.f32 %v538_v8, %v529_v53  ;;  %v586_v20 = vmul.f32 %v538_v8, %v1127_v22 }
 0x1bc   :  { %v587_v51 = vadd.f32 %v585_v26, %v583_v59 }
 0x1bd   :  { %v992_v13 = vpop.eup %991  ;;  %v588_v52 = vadd.f32 %v586_v20, %v584_v16  ;;  %v2017_v16 = vld [vmem:[#allocation9_spill] sm:$0xff]  ;;  %v2018_v20 = vld [vmem:[#allocation7_spill] sm:$0xff] }
 0x1be   :  { %v511_v0 = vmul.f32 %v992_v13, %v507_v27 }
 0x1c0   :  { %v1624_v21 = vmin.f32 %v511_v0, %v1244_v23 }
 0x1c2   :  { %v994_v15 = vpop.eup %993  ;;  %v1627_v63 = vmul.f32 %v1624_v21, %v461_v37  ;;  %539 = vrot.lane.b32.xlu0 %v1624_v21, %s1002_s30  ;;  %v551_v1 = vrot.slane %v1624_v21, 7  ;;  %v555_v32 = vrot.slane %v1624_v21, 1 }
 0x1c3   :  { %v512_v14 = vmul.f32 %v994_v15, %v508_v6 }
 0x1c5   :  { %v1632_v22 = vmin.f32 %v512_v14, %v1252_v41 }
 0x1c6   :  { %543 = vrot.lane.b32.xlu0 %v1624_v21, %s1001_s29 }
 0x1c7   :  { %v1638_v23 = vmul.f32 %v1632_v22, %v462_v48  ;;  %541 = vrot.lane.b32.xlu1 %v1632_v22, %s1002_s30  ;;  %v552_v37 = vrot.slane %v1632_v22, 7  ;;  %v556_v2 = vrot.slane %v1632_v22, 1 }
 0x1c9   :  { %v554_v41 = vsel %vm49_vm0, %v552_v37, %v551_v1  ;;  %v557_v39 = vsel %vm54_vm1, %v555_v32, %v556_v2  ;;  %v553_v53 = vsel %vm49_vm0, %v551_v1, %v552_v37  ;;  %v558_v48 = vsel %vm54_vm1, %v556_v2, %v555_v32  ;;  %v2020_v1 = vld [vmem:[#allocation6_spill] sm:$0xff] }
 0x1ca   :  { %v559_v61 = vsel %vm57_vm2, 0.0, %v554_v41  ;;  %v605_v26 = vmul.f32 %v557_v39, %v1160_v43  ;;  %v562_v18 = vsel %vm62_vm3, 0.0, %v558_v48  ;;  %v604_v59 = vmul.f32 %v553_v53, %v2017_v16  ;;  %723 = vrot.lane.b32.xlu0 %v1273_v60, %s1002_s30  ;;  %v1677_v41 = vld [vmem:[%s1989_s0] sm:$0xff]  ;;  %v2021_v16 = vld [vmem:[#allocation5_spill] sm:$0xff] }
 0x1cb   :  { %545 = vrot.lane.b32.xlu1 %v1632_v22, %s1001_s29  ;;  %v573_v8 = vadd.f32 %v559_v61, %v557_v39  ;;  %v603_v27 = vmul.f32 %v559_v61, %v2018_v20  ;;  %v1664_v13 = vadd.f32 %v562_v18, %v553_v53  ;;  %v606_v0 = vmul.f32 %v562_v18, %v2019_v58  ;;  %v2022_v20 = vld [vmem:[#allocation8_spill] sm:$0xff]  ;;  %v1691_v58 = vld [vmem:[%s1989_s0 + $0x8] sm:$0xff] }
 0x1cc   :  { %v597_v39 = vmul.f32 %v1677_v41, %v1581_v45  ;;  %v569_v61 = vmul.f32 4.0, %v1581_v45 }
 0x1cd   :  { %v607_v6 = vadd.f32 %v605_v26, %v603_v27  ;;  %v1667_v43 = vadd.f32 %v606_v0, %v604_v59  ;;  %v598_v0 = vmul.f32 %v1691_v58, %v1592_v28 }
 0x1ce   :  { %v599_v45 = vmul.f32 4.0, %v597_v39 }
 0x1cf   :  { %725 = vrot.lane.b32.xlu1 %v1300_v40, %s1002_s30 }
 0x224   :  { %v516_v15 = vpop.permute.xlu0 %515 }
 0x225   :  { %v523_v14 = vsel %vm41_vm5, 0.0, %v516_v15 }
 0x226   :  { %v589_v37 = vmul.f32 %v523_v14, %v2020_v1  ;;  %v565_v32 = vadd.f32 %v563_v35, %v523_v14 }
 0x228   :  { %v520_v2 = vpop.permute.xlu0 %519  ;;  %v518_v53 = vpop.permute.xlu1 %517  ;;  %v591_v18 = vadd.f32 %v589_v37, %v587_v51  ;;  %v570_v37 = vmul.f32 4.0, %v1592_v28 }
 0x229   :  { %v525_v48 = vsel %vm44_vm4, 0.0, %v520_v2  ;;  %v524_v26 = vsel %vm41_vm5, 0.0, %v518_v53 }
 0x22a   :  { %v567_v35 = vadd.f32 %v565_v32, %v525_v48  ;;  %v593_v59 = vmul.f32 %v525_v48, %v2021_v16  ;;  %v590_v27 = vmul.f32 %v524_v26, %v2022_v20  ;;  %v566_v1 = vadd.f32 %v564_v44, %v524_v26 }
 0x22b   :  { %v600_v20 = vmul.f32 4.0, %v598_v0  ;;  %v643_v26 = vmul.f32 %v1525_v56, %v1426_v36 }
 0x22c   :  { %v571_v15 = vsub.f32 %v567_v35, %v569_v61  ;;  %v595_v14 = vadd.f32 %v593_v59, %v591_v18  ;;  %v522_v2 = vpop.permute.xlu1 %521  ;;  %v592_v53 = vadd.f32 %v590_v27, %v588_v52 }
 0x22d   :  { %v526_v51 = vsel %vm44_vm4, 0.0, %v522_v2 }
 0x22e   :  { %v601_v32 = vsub.f32 %v595_v14, %v599_v45  ;;  %v568_v48 = vadd.f32 %v566_v1, %v526_v51  ;;  %v594_v16 = vmul.f32 %v526_v51, %v1168_v46  ;;  %v627_v11 = vmul.f32 %v571_v15, %v1426_v36 }
 0x230   :  { %v625_v29 = vadd.f32 %v1587_v47, %v601_v32  ;;  %v572_v61 = vsub.f32 %v568_v48, %v570_v37  ;;  %v596_v18 = vadd.f32 %v594_v16, %v592_v53  ;;  %v647_v47 = vmul.f32 %v1523_v30, %v1487_v10  ;;  %v671_v48 = vld [vmem:[%s1993_s4] sm:$0xff] }
 0x231   :  { %v648_v30 = vmul.f32 %v1528_v49, %v1495_v54 }
 0x232   :  { %v629_v39 = vsub.f32 %v625_v29, %v627_v11  ;;  %v602_v44 = vsub.f32 %v596_v18, %v600_v20  ;;  %v628_v52 = vmul.f32 %v572_v61, %v1441_v7  ;;  %v644_v29 = vmul.f32 %v1541_v3, %v1441_v7 }
 0x234   :  { %v631_v35 = vmul.f32 1.5, %v629_v39  ;;  %v626_v28 = vadd.f32 %v1597_v34, %v602_v44  ;;  %v540_v59 = vpop.permute.xlu0 %539  ;;  %v1715_v34 = vld [vmem:[%s1990_s1] sm:$0xff] }
 0x235   :  { %v547_v46 = vsel %vm41_vm5, 0.0, %v540_v59  ;;  %v617_v14 = vmul.f32 %v1715_v34, %v1624_v21 }
 0x236   :  { %v645_v27 = vsub.f32 %v631_v35, %v643_v26  ;;  %v630_v0 = vsub.f32 %v626_v28, %v628_v52  ;;  %v609_v11 = vmul.f32 %v547_v46, %v1205_v17  ;;  %v575_v15 = vadd.f32 %v573_v8, %v547_v46 }
 0x237   :  { %v579_v17 = vmul.f32 4.0, %v1624_v21  ;;  %v619_v16 = vmul.f32 4.0, %v617_v14  ;;  %v673_v35 = vmul.f32 0.01, %v671_v48  ;;  %v580_v52 = vmul.f32 4.0, %v1632_v22 }
 0x238   :  { %v632_v56 = vmul.f32 1.5, %v630_v0  ;;  %v544_v45 = vpop.permute.xlu0 %543  ;;  %v649_v1 = vsub.f32 %v645_v27, %v647_v47  ;;  %v611_v2 = vadd.f32 %v609_v11, %v607_v6 }
 0x239   :  { %v549_v3 = vsel %vm44_vm4, 0.0, %v544_v45  ;;  %v542_v8 = vpop.permute.xlu1 %541 }
 0x23a   :  { %v646_v51 = vsub.f32 %v632_v56, %v644_v29  ;;  %v577_v37 = vadd.f32 %v575_v15, %v549_v3  ;;  %v613_v32 = vmul.f32 %v549_v3, %v1216_v31  ;;  %v548_v53 = vsel %vm41_vm5, 0.0, %v542_v8  ;;  %v998_v31 = vld [vmem:[%s1990_s1 + $0x8] sm:$0xff] }
 0x23b   :  { %v610_v49 = vmul.f32 %v548_v53, %v1212_v25  ;;  %v651_v6 = vmul.f32 0.01, %v649_v1  ;;  %v576_v18 = vadd.f32 %v1664_v13, %v548_v53  ;;  %v618_v39 = vmul.f32 %v998_v31, %v1632_v22  ;;  %v672_v25 = vld [vmem:[%s1993_s4 + $0x8] sm:$0xff] }
 0x23c   :  { %v581_v21 = vsub.f32 %v577_v37, %v579_v17  ;;  %v615_v20 = vadd.f32 %v613_v32, %v611_v2  ;;  %v650_v61 = vsub.f32 %v646_v51, %v648_v30  ;;  %v674_v56 = vmul.f32 0.01, %v672_v25 }
 0x23d   :  { %v546_v44 = vpop.permute.xlu1 %545  ;;  %v653_v26 = vadd.f32 %v1677_v41, %v651_v6  ;;  %v612_v46 = vadd.f32 %v610_v49, %v1667_v43  ;;  %v620_v15 = vmul.f32 4.0, %v618_v39  ;;  %v661_v17 = vmul.f32 %v1565_v55, %v1487_v10 }
 0x23e   :  { %v621_v28 = vsub.f32 %v615_v20, %v619_v16  ;;  %v550_v13 = vsel %vm44_vm4, 0.0, %v546_v44  ;;  %v652_v59 = vmul.f32 0.01, %v650_v61  ;;  %v637_v11 = vmul.f32 %v581_v21, %v1487_v10  ;;  %v724_v21 = vpop.permute.xlu0 %723 }
 0x23f   :  { %v578_v47 = vadd.f32 %v576_v18, %v550_v13  ;;  %v614_v27 = vmul.f32 %v550_v13, %v1222_v33  ;;  %v655_v0 = vsub.f32 %v653_v26, %v1407_v42  ;;  %v657_v33 = vmul.f32 %v1567_v9, %v1426_v36 }
 0x240   :  { %v635_v41 = vadd.f32 %v1627_v63, %v621_v28  ;;  %v654_v29 = vadd.f32 %v1691_v58, %v652_v59  ;;  %v658_v36 = vmul.f32 %v1578_v62, %v1441_v7  ;;  %v678_v7 = vld [vmem:[%s1994_s5 + $0x8] sm:$0xff]  ;;  %v731_v28 = vsel %vm41_vm5, %v1273_v60, %v724_v21 }
 0x241   :  { %v582_v22 = vsub.f32 %v578_v47, %v580_v52  ;;  %v616_v14 = vadd.f32 %v614_v27, %v612_v46  ;;  %v1749_v45 = vsub.f32 %v655_v0, %v673_v35  ;;  %v680_v53 = vmul.f32 0.01, %v678_v7 }
 0x242   :  { %v639_v1 = vsub.f32 %v635_v41, %v637_v11  ;;  %v656_v43 = vsub.f32 %v654_v29, %v1433_v38  ;;  %v747_v35 = vadd.f32 %v1450_v57, %v1445_v24  ;;  %v2024_v24 = vld [vmem:[#allocation11_spill] sm:$0xff]  ;;  %v2025_v57 = vld [vmem:[#allocation12_spill] sm:$0xff] }
 0x243   :  { %v622_v30 = vsub.f32 %v616_v14, %v620_v15  ;;  %683 = vrot.lane.b32.xlu0 %v1749_v45, %s1002_s30  ;;  %v638_v2 = vmul.f32 %v582_v22, %v1495_v54  ;;  %v748_v41 = vadd.f32 %v2025_v57, %v2024_v24 }
 0x244   :  { %v641_v42 = vmul.f32 1.5, %v639_v1  ;;  %v1756_v63 = vsub.f32 %v656_v43, %v674_v56  ;;  %v749_v29 = vadd.f32 %v747_v35, %v731_v28  ;;  %v999_v56 = vld [vmem:[%s1992_s2] sm:$0xff] }
 0x245   :  { %v636_v58 = vadd.f32 %v1638_v23, %v622_v30  ;;  %v662_v23 = vmul.f32 %v1575_v50, %v1495_v54  ;;  %v677_v54 = vld [vmem:[%s1994_s5] sm:$0xff]  ;;  %v753_v15 = vmul.f32 4.0, %v999_v56 }
 0x246   :  { %v659_v3 = vsub.f32 %v641_v42, %v657_v33  ;;  %685 = vrot.lane.b32.xlu1 %v1756_v63, %s1002_s30  ;;  %v679_v49 = vmul.f32 0.01, %v677_v54 }
 0x247   :  { %v640_v38 = vsub.f32 %v636_v58, %v638_v2  ;;  %687 = vrot.lane.b32.xlu0 %v1749_v45, %s1001_s29 }
 0x248   :  { %v663_v8 = vsub.f32 %v659_v3, %v661_v17 }
 0x249   :  { %v642_v9 = vmul.f32 1.5, %v640_v38 }
 0x24a   :  { %689 = vrot.lane.b32.xlu1 %v1756_v63, %s1001_s29  ;;  %v665_v37 = vmul.f32 0.01, %v663_v8 }
 0x24b   :  { %v660_v10 = vsub.f32 %v642_v9, %v658_v36  ;;  %727 = vrot.lane.b32.xlu0 %v1273_v60, %s1001_s29  ;;  %v1000_v36 = vld [vmem:[%s1992_s2 + $0x8] sm:$0xff] }
 0x24c   :  { %v667_v62 = vadd.f32 %v1715_v34, %v665_v37  ;;  %v726_v34 = vpop.permute.xlu1 %725  ;;  %v754_v9 = vmul.f32 4.0, %v1000_v36 }
 0x24d   :  { %v664_v55 = vsub.f32 %v660_v10, %v662_v23  ;;  %v732_v60 = vsel %vm41_vm5, %v1300_v40, %v726_v34 }
 0x24e   :  { %729 = vrot.lane.b32.xlu1 %v1300_v40, %s1001_s29  ;;  %v669_v48 = vsub.f32 %v667_v62, %v1481_v4  ;;  %v750_v3 = vadd.f32 %v748_v41, %v732_v60 }
 0x24f   :  { %v666_v51 = vmul.f32 0.01, %v664_v55 }
 0x250   :  { %v1787_v16 = vsub.f32 %v669_v48, %v679_v49 }
 0x251   :  { %v668_v32 = vadd.f32 %v998_v31, %v666_v51 }
 0x252   :  { %v695_v61 = vrot.slane %v1787_v16, 7 }
 0x253   :  { %v670_v50 = vsub.f32 %v668_v32, %v1489_v19  ;;  %v699_v19 = vrot.slane %v1787_v16, 1 }
 0x255   :  { %v1785_v6 = vsub.f32 %v670_v50, %v680_v53 }
 0x257   :  { %v696_v20 = vrot.slane %v1785_v6, 7  ;;  %v700_v18 = vrot.slane %v1785_v6, 1 }
 0x259   :  { %v698_v31 = vsel %vm49_vm0, %v696_v20, %v695_v61  ;;  %v701_v4 = vsel %vm54_vm1, %v699_v19, %v700_v18  ;;  %v702_v26 = vsel %vm54_vm1, %v700_v18, %v699_v19  ;;  %v697_v59 = vsel %vm49_vm0, %v695_v61, %v696_v20 }
 0x25a   :  { %v703_v44 = vsel %vm57_vm2, 0.0, %v698_v31  ;;  %v706_v47 = vsel %vm62_vm3, 0.0, %v702_v26 }
 0x25b   :  { %v711_v52 = vsub.f32 %v701_v4, %v703_v44  ;;  %v712_v22 = vsub.f32 %v706_v47, %v697_v59 }
 0x25d   :  { %v713_v1 = vmul.f32 0.5, %v711_v52  ;;  %v714_v38 = vmul.f32 0.5, %v712_v22 }
 0x2b5   :  { %v684_v39 = vpop.permute.xlu0 %683 }
 0x2b6   :  { %v691_v27 = vsel %vm41_vm5, 0.0, %v684_v39 }
 0x2b8   :  { %v686_v25 = vpop.permute.xlu1 %685 }
 0x2b9   :  { %v688_v13 = vpop.permute.xlu0 %687  ;;  %v692_v30 = vsel %vm41_vm5, 0.0, %v686_v25 }
 0x2ba   :  { %v693_v0 = vsel %vm44_vm4, 0.0, %v688_v13 }
 0x2bb   :  { %v707_v11 = vsub.f32 %v693_v0, %v691_v27 }
 0x2bc   :  { %v690_v14 = vpop.permute.xlu1 %689 }
 0x2bd   :  { %v709_v43 = vmul.f32 0.5, %v707_v11  ;;  %v728_v33 = vpop.permute.xlu0 %727  ;;  %v694_v42 = vsel %vm44_vm4, 0.0, %v690_v14 }
 0x2be   :  { %v733_v58 = vsel %vm44_vm4, %v999_v56, %v728_v33  ;;  %v708_v40 = vsub.f32 %v694_v42, %v692_v30 }
 0x2bf   :  { %v715_v2 = vadd.f32 %v713_v1, %v709_v43  ;;  %v751_v17 = vadd.f32 %v749_v29, %v733_v58 }
 0x2c0   :  { %v710_v8 = vmul.f32 0.5, %v708_v40  ;;  %v730_v23 = vpop.permute.xlu1 %729 }
 0x2c1   :  { %v717_v10 = vsub.f32 0.0, %v715_v2  ;;  %v755_v55 = vsub.f32 %v751_v17, %v753_v15  ;;  %v734_v51 = vsel %vm44_vm4, %v1000_v36, %v730_v23 }
 0x2c2   :  { %v716_v37 = vadd.f32 %v714_v38, %v710_v8  ;;  %v752_v32 = vadd.f32 %v750_v3, %v734_v51 }
 0x2c3   :  { %v757_v7 = vmul.f32 -0.25, %v755_v55  ;;  %v1833_v50 = vmul.f32 -25.0, %v717_v10 }
 0x2c4   :  { %v718_v62 = vsub.f32 0.0, %v716_v37  ;;  %v756_v54 = vsub.f32 %v752_v32, %v754_v9 }
 0x2c5   :  { %v759_v53 = vsub.f32 %v999_v56, %v757_v7 }
 0x2c6   :  { %v758_v48 = vmul.f32 -0.25, %v756_v54  ;;  %v1836_v21 = vmul.f32 -25.0, %v718_v62 }
 0x2c7   :  { %v761_v49 = vadd.f32 %v759_v53, %v1833_v50 }
 0x2c8   :  { %v760_v20 = vsub.f32 %v1000_v36, %v758_v48 }
 0x2c9   :  { %763 = vrot.lane.b32.xlu0 %v761_v49, %s1002_s30  ;;  %v775_v18 = vrot.slane %v761_v49, 7  ;;  %v779_v39 = vrot.slane %v761_v49, 1  ;;  %v793_v11 = vmul.f32 4.0, %v761_v49 }
 0x2ca   :  { %v762_v61 = vadd.f32 %v760_v20, %v1836_v21 }
 0x2cc   :  { %765 = vrot.lane.b32.xlu1 %v762_v61, %s1002_s30  ;;  %v776_v34 = vrot.slane %v762_v61, 7  ;;  %v780_v31 = vrot.slane %v762_v61, 1  ;;  %v794_v14 = vmul.f32 4.0, %v762_v61 }
 0x2cd   :  { %767 = vrot.lane.b32.xlu0 %v761_v49, %s1001_s29 }
 0x2ce   :  { %v778_v19 = vsel %vm49_vm0, %v776_v34, %v775_v18  ;;  %v781_v4 = vsel %vm54_vm1, %v779_v39, %v780_v31  ;;  %v782_v26 = vsel %vm54_vm1, %v780_v31, %v779_v39  ;;  %v777_v52 = vsel %vm49_vm0, %v775_v18, %v776_v34 }
 0x2cf   :  { %v783_v44 = vsel %vm57_vm2, %v761_v49, %v778_v19  ;;  %v786_v13 = vsel %vm62_vm3, %v762_v61, %v782_v26 }
 0x2d0   :  { %769 = vrot.lane.b32.xlu1 %v762_v61, %s1001_s29  ;;  %v787_v28 = vadd.f32 %v783_v44, %v781_v4  ;;  %v788_v57 = vadd.f32 %v786_v13, %v777_v52 }
 0x33b   :  { %v764_v35 = vpop.permute.xlu0 %763 }
 0x33c   :  { %v771_v25 = vsel %vm41_vm5, %v761_v49, %v764_v35 }
 0x33d   :  { %v789_v47 = vadd.f32 %v787_v28, %v771_v25 }
 0x33e   :  { %v766_v59 = vpop.permute.xlu1 %765 }
 0x33f   :  { %v768_v27 = vpop.permute.xlu0 %767  ;;  %v772_v0 = vsel %vm41_vm5, %v762_v61, %v766_v59 }
 0x340   :  { %v773_v24 = vsel %vm44_vm4, %v761_v49, %v768_v27  ;;  %v790_v29 = vadd.f32 %v788_v57, %v772_v0 }
 0x341   :  { %v791_v41 = vadd.f32 %v789_v47, %v773_v24 }
 0x342   :  { %v770_v60 = vpop.permute.xlu1 %769 }
 0x343   :  { %v795_v56 = vsub.f32 %v791_v41, %v793_v11  ;;  %v774_v15 = vsel %vm44_vm4, %v762_v61, %v770_v60 }
 0x344   :  { %v792_v22 = vadd.f32 %v790_v29, %v774_v15 }
 0x345   :  { %v797_v1 = vmul.f32 -0.25, %v795_v56 }
 0x346   :  { %v796_v43 = vsub.f32 %v792_v22, %v794_v14 }
 0x347   :  { %v799_v30 = vsub.f32 %v761_v49, %v797_v1 }
 0x348   :  { %v798_v33 = vmul.f32 -0.25, %v796_v43 }
 0x349   :  { %v801_v42 = vadd.f32 %v799_v30, %v1833_v50 }
 0x34a   :  { %v800_v58 = vsub.f32 %v762_v61, %v798_v33 }
 0x34b   :  { %803 = vrot.lane.b32.xlu0 %v801_v42, %s1002_s30  ;;  %v815_v17 = vrot.slane %v801_v42, 7  ;;  %v819_v8 = vrot.slane %v801_v42, 1  ;;  %v833_v61 = vmul.f32 4.0, %v801_v42 }
 0x34c   :  { %v802_v40 = vadd.f32 %v800_v58, %v1836_v21 }
 0x34e   :  { %805 = vrot.lane.b32.xlu1 %v802_v40, %s1002_s30  ;;  %v816_v2 = vrot.slane %v802_v40, 7  ;;  %v820_v3 = vrot.slane %v802_v40, 1  ;;  %v834_v4 = vmul.f32 4.0, %v802_v40 }
 0x34f   :  { %807 = vrot.lane.b32.xlu0 %v801_v42, %s1001_s29 }
 0x350   :  { %v818_v38 = vsel %vm49_vm0, %v816_v2, %v815_v17  ;;  %v821_v36 = vsel %vm54_vm1, %v819_v8, %v820_v3  ;;  %v822_v23 = vsel %vm54_vm1, %v820_v3, %v819_v8  ;;  %v817_v37 = vsel %vm49_vm0, %v815_v17, %v816_v2 }
 0x351   :  { %v823_v9 = vsel %vm57_vm2, %v801_v42, %v818_v38  ;;  %v826_v32 = vsel %vm62_vm3, %v802_v40, %v822_v23 }
 0x352   :  { %809 = vrot.lane.b32.xlu1 %v802_v40, %s1001_s29  ;;  %v827_v51 = vadd.f32 %v823_v9, %v821_v36  ;;  %v828_v49 = vadd.f32 %v826_v32, %v817_v37 }
 0x3bd   :  { %v804_v10 = vpop.permute.xlu0 %803 }
 0x3be   :  { %v811_v55 = vsel %vm41_vm5, %v801_v42, %v804_v10 }
 0x3bf   :  { %v829_v62 = vadd.f32 %v827_v51, %v811_v55 }
 0x3c0   :  { %v806_v7 = vpop.permute.xlu1 %805 }
 0x3c1   :  { %v808_v54 = vpop.permute.xlu0 %807  ;;  %v812_v53 = vsel %vm41_vm5, %v802_v40, %v806_v7 }
 0x3c2   :  { %v813_v48 = vsel %vm44_vm4, %v801_v42, %v808_v54  ;;  %v830_v34 = vadd.f32 %v828_v49, %v812_v53 }
 0x3c3   :  { %v831_v20 = vadd.f32 %v829_v62, %v813_v48 }
 0x3c4   :  { %v810_v18 = vpop.permute.xlu1 %809 }
 0x3c5   :  { %v835_v31 = vsub.f32 %v831_v20, %v833_v61  ;;  %v814_v19 = vsel %vm44_vm4, %v802_v40, %v810_v18 }
 0x3c6   :  { %v832_v39 = vadd.f32 %v830_v34, %v814_v19 }
 0x3c7   :  { %v837_v44 = vmul.f32 -0.25, %v835_v31 }
 0x3c8   :  { %v836_v26 = vsub.f32 %v832_v39, %v834_v4 }
 0x3c9   :  { %v839_v35 = vsub.f32 %v801_v42, %v837_v44 }
 0x3ca   :  { %v838_v25 = vmul.f32 -0.25, %v836_v26 }
 0x3cb   :  { %v841_v28 = vadd.f32 %v839_v35, %v1833_v50 }
 0x3cc   :  { %v840_v52 = vsub.f32 %v802_v40, %v838_v25 }
 0x3cd   :  { %843 = vrot.lane.b32.xlu0 %v841_v28, %s1002_s30  ;;  %v855_v47 = vrot.slane %v841_v28, 7  ;;  %v859_v24 = vrot.slane %v841_v28, 1  ;;  %v873_v40 = vmul.f32 4.0, %v841_v28 }
 0x3ce   :  { %v842_v13 = vadd.f32 %v840_v52, %v1836_v21 }
 0x3d0   :  { %845 = vrot.lane.b32.xlu1 %v842_v13, %s1002_s30  ;;  %v856_v59 = vrot.slane %v842_v13, 7  ;;  %v860_v27 = vrot.slane %v842_v13, 1  ;;  %v874_v36 = vmul.f32 4.0, %v842_v13 }
 0x3d1   :  { %847 = vrot.lane.b32.xlu0 %v841_v28, %s1001_s29 }
 0x3d2   :  { %v858_v0 = vsel %vm49_vm0, %v856_v59, %v855_v47  ;;  %v861_v57 = vsel %vm54_vm1, %v859_v24, %v860_v27  ;;  %v862_v11 = vsel %vm54_vm1, %v860_v27, %v859_v24  ;;  %v857_v15 = vsel %vm49_vm0, %v855_v47, %v856_v59 }
 0x3d3   :  { %v863_v41 = vsel %vm57_vm2, %v841_v28, %v858_v0  ;;  %v866_v22 = vsel %vm62_vm3, %v842_v13, %v862_v11 }
 0x3d4   :  { %849 = vrot.lane.b32.xlu1 %v842_v13, %s1001_s29  ;;  %v867_v56 = vadd.f32 %v863_v41, %v861_v57  ;;  %v868_v42 = vadd.f32 %v866_v22, %v857_v15 }
 0x43f   :  { %v844_v29 = vpop.permute.xlu0 %843 }
 0x440   :  { %v851_v60 = vsel %vm41_vm5, %v841_v28, %v844_v29 }
 0x441   :  { %v869_v1 = vadd.f32 %v867_v56, %v851_v60 }
 0x442   :  { %v846_v14 = vpop.permute.xlu1 %845 }
 0x443   :  { %v848_v43 = vpop.permute.xlu0 %847  ;;  %v852_v30 = vsel %vm41_vm5, %v842_v13, %v846_v14 }
 0x444   :  { %v853_v33 = vsel %vm44_vm4, %v841_v28, %v848_v43  ;;  %v870_v2 = vadd.f32 %v868_v42, %v852_v30 }
 0x445   :  { %v871_v58 = vadd.f32 %v869_v1, %v853_v33 }
 0x446   :  { %v850_v17 = vpop.permute.xlu1 %849 }
 0x447   :  { %v875_v3 = vsub.f32 %v871_v58, %v873_v40  ;;  %v854_v38 = vsel %vm44_vm4, %v842_v13, %v850_v17 }
 0x448   :  { %v872_v8 = vadd.f32 %v870_v2, %v854_v38 }
 0x449   :  { %v877_v9 = vmul.f32 -0.25, %v875_v3 }
 0x44a   :  { %v876_v23 = vsub.f32 %v872_v8, %v874_v36 }
 0x44b   :  { %v879_v10 = vsub.f32 %v841_v28, %v877_v9 }
 0x44c   :  { %v878_v55 = vmul.f32 -0.25, %v876_v23 }
 0x44d   :  { %v881_v51 = vadd.f32 %v879_v10, %v1833_v50 }
 0x44e   :  { %v880_v37 = vsub.f32 %v842_v13, %v878_v55 }
 0x44f   :  { %883 = vrot.lane.b32.xlu0 %v881_v51, %s1002_s30  ;;  %v895_v62 = vrot.slane %v881_v51, 7  ;;  %v899_v48 = vrot.slane %v881_v51, 1  ;;  %v913_v13 = vmul.f32 4.0, %v881_v51 }
 0x450   :  { %v882_v32 = vadd.f32 %v880_v37, %v1836_v21 }
 0x452   :  { %885 = vrot.lane.b32.xlu1 %v882_v32, %s1002_s30  ;;  %v896_v7 = vrot.slane %v882_v32, 7  ;;  %v900_v54 = vrot.slane %v882_v32, 1  ;;  %v914_v57 = vmul.f32 4.0, %v882_v32 }
 0x453   :  { %887 = vrot.lane.b32.xlu0 %v881_v51, %s1001_s29 }
 0x454   :  { %v898_v53 = vsel %vm49_vm0, %v896_v7, %v895_v62  ;;  %v901_v49 = vsel %vm54_vm1, %v899_v48, %v900_v54  ;;  %v902_v61 = vsel %vm54_vm1, %v900_v54, %v899_v48  ;;  %v897_v19 = vsel %vm49_vm0, %v895_v62, %v896_v7 }
 0x455   :  { %v903_v20 = vsel %vm57_vm2, %v881_v51, %v898_v53  ;;  %v906_v39 = vsel %vm62_vm3, %v882_v32, %v902_v61 }
 0x456   :  { %889 = vrot.lane.b32.xlu1 %v882_v32, %s1001_s29  ;;  %v907_v31 = vadd.f32 %v903_v20, %v901_v49  ;;  %v908_v28 = vadd.f32 %v906_v39, %v897_v19 }
 0x4c1   :  { %v884_v34 = vpop.permute.xlu0 %883 }
 0x4c2   :  { %v891_v18 = vsel %vm41_vm5, %v881_v51, %v884_v34 }
 0x4c3   :  { %v909_v44 = vadd.f32 %v907_v31, %v891_v18 }
 0x4c4   :  { %v886_v4 = vpop.permute.xlu1 %885 }
 0x4c5   :  { %v888_v26 = vpop.permute.xlu0 %887  ;;  %v892_v35 = vsel %vm41_vm5, %v882_v32, %v886_v4 }
 0x4c6   :  { %v893_v25 = vsel %vm44_vm4, %v881_v51, %v888_v26  ;;  %v910_v59 = vadd.f32 %v908_v28, %v892_v35 }
 0x4c7   :  { %v911_v52 = vadd.f32 %v909_v44, %v893_v25 }
 0x4c8   :  { %v890_v47 = vpop.permute.xlu1 %889 }
 0x4c9   :  { %v915_v27 = vsub.f32 %v911_v52, %v913_v13  ;;  %v894_v0 = vsel %vm44_vm4, %v882_v32, %v890_v47 }
 0x4ca   :  { %v912_v24 = vadd.f32 %v910_v59, %v894_v0 }
 0x4cb   :  { %v917_v41 = vmul.f32 -0.25, %v915_v27 }
 0x4cc   :  { %v916_v11 = vsub.f32 %v912_v24, %v914_v57 }
 0x4cd   :  { %v919_v29 = vsub.f32 %v881_v51, %v917_v41 }
 0x4ce   :  { %v918_v60 = vmul.f32 -0.25, %v916_v11 }
 0x4cf   :  { %v921_v56 = vadd.f32 %v919_v29, %v1833_v50 }
 0x4d0   :  { %v920_v15 = vsub.f32 %v882_v32, %v918_v60 }
 0x4d1   :  { %963 = vst [vmem:[%s1995_s8] sm:$0xff] %v921_v56  ;;  %923 = vrot.lane.b32.xlu0 %v921_v56, %s1002_s30  ;;  %v935_v14 = vrot.slane %v921_v56, 7  ;;  %v939_v1 = vrot.slane %v921_v56, 1 }
 0x4d2   :  { %v922_v22 = vadd.f32 %v920_v15, %v1836_v21 }
 0x4d4   :  { %v936_v43 = vrot.slane %v922_v22, 7  ;;  %v940_v30 = vrot.slane %v922_v22, 1  ;;  %964 = vst [vmem:[%s1995_s8 + $0x8] sm:$0xff] %v922_v22  ;;  %925 = vrot.lane.b32.xlu1 %v922_v22, %s1002_s30 }
 0x4d5   :  { %927 = vrot.lane.b32.xlu0 %v921_v56, %s1001_s29 }
 0x4d6   :  { %v937_v50 = vsel %vm49_vm0, %v935_v14, %v936_v43  ;;  %v938_v33 = vsel %vm49_vm0, %v936_v43, %v935_v14  ;;  %v941_v21 = vsel %vm54_vm1, %v939_v1, %v940_v30  ;;  %v942_v42 = vsel %vm54_vm1, %v940_v30, %v939_v1 }
 0x4d7   :  { %v943_v58 = vsel %vm57_vm2, %v921_v56, %v938_v33  ;;  %v946_v40 = vsel %vm62_vm3, %v922_v22, %v942_v42 }
 0x4d8   :  { %v955_v2 = vsub.f32 %v941_v21, %v943_v58  ;;  %v956_v17 = vsub.f32 %v946_v40, %v937_v50  ;;  %929 = vrot.lane.b32.xlu1 %v922_v22, %s1001_s29 }
 0x4da   :  { %v957_v3 = vmul.f32 0.005, %v955_v2  ;;  %v958_v38 = vmul.f32 0.005, %v956_v17 }
 0x4dc   :  { %v959_v8 = vsub.f32 %v1787_v16, %v957_v3  ;;  %v960_v36 = vsub.f32 %v1785_v6, %v958_v38 }
 0x4de   :  { %961 = vst [vmem:[%s1996_s7] sm:$0xff] %v959_v8  ;;  %962 = vst [vmem:[%s1996_s7 + $0x8] sm:$0xff] %v960_v36 }
 0x543   :  { %v924_v5 = vpop.permute.xlu0 %923 }
 0x544   :  { %v931_v23 = vsel %vm41_vm5, %v921_v56, %v924_v5 }
 0x546   :  { %v926_v46 = vpop.permute.xlu1 %925 }
 0x547   :  { %v928_v9 = vpop.permute.xlu0 %927  ;;  %v932_v51 = vsel %vm41_vm5, %v922_v22, %v926_v46 }
 0x548   :  { %v933_v10 = vsel %vm44_vm4, %v921_v56, %v928_v9 }
 0x549   :  { %v947_v16 = vsub.f32 %v933_v10, %v931_v23 }
 0x54a   :  { %v930_v55 = vpop.permute.xlu1 %929 }
 0x54b   :  { %v949_v6 = vmul.f32 0.005, %v947_v16  ;;  %v934_v37 = vsel %vm44_vm4, %v922_v22, %v930_v55 }
 0x54c   :  { %v948_v32 = vsub.f32 %v934_v37, %v932_v51 }
 0x54d   :  { %v951_v7 = vsub.f32 %v1749_v45, %v949_v6 }
 0x54e   :  { %v950_v62 = vmul.f32 0.005, %v948_v32 }
 0x54f   :  { %953 = vst [vmem:[%s1997_s6] sm:$0xff] %v951_v7 }
 0x550   :  { %v952_v54 = vsub.f32 %v1756_v63, %v950_v62 }
 0x552   :  { %954 = vst [vmem:[%s1997_s6 + $0x8] sm:$0xff] %v952_v54 }

</bundles_post_ra>
